<compile_context>
chip_gen: v6e
topology: v6e:2x2x1
jax: 0.10.0
libtpu: 0.0.40
codegen_flags: <defaults>
</compile_context>

<pallas_src>
import functools

import jax
import jax.numpy as jnp
from jax.experimental import pallas as pl
from jax.experimental.pallas import tpu as pltpu


def _round_up(x, m):
    return ((x + m - 1) // m) * m


# ----------------------------------------------------------------------------
# Pallas kernels
# ----------------------------------------------------------------------------
def _conv_bn_crelu_kernel(patches_ref, w_ref, shift_ref, pos_ref, neg_ref):
    """Fused  (im2col-patches @ W_scaled) + shift  followed by CReLU.

    patches: [TM, Kp]     bf16 im2col tile (K zero-padded to 128 multiple)
    w:       [Kp, Cout]   bf16 weights with BN scale folded in (resident)
    shift:   [1, Cout]    f32  (bias - mean) * scale + beta (resident)
    pos:     [TM, Cout]   f32  relu(y)
    neg:     [TM, Cout]   f32  relu(-y)
    """
    y = jnp.dot(patches_ref[...], w_ref[...], preferred_element_type=jnp.float32)
    y = y + shift_ref[...]
    pos_ref[...] = jnp.maximum(y, 0.0)
    neg_ref[...] = jnp.maximum(-y, 0.0)


def _maxpool_pair_kernel(wp_ref, wn_ref, op_ref, on_ref, *, kk):
    """Max over the pooling-window axis for both CReLU halves.

    wp/wn: [KK, TM, C]   (KK = KH*KW window positions, spatial pad = -inf)
    op/on: [TM, C]
    """
    acc_p = wp_ref[0]
    acc_n = wn_ref[0]
    for k in range(1, kk):
        acc_p = jnp.maximum(acc_p, wp_ref[k])
        acc_n = jnp.maximum(acc_n, wn_ref[k])
    op_ref[...] = acc_p
    on_ref[...] = acc_n


# ----------------------------------------------------------------------------
# Wrappers around pallas_call
# ----------------------------------------------------------------------------
def conv_bn_crelu(patches, w, shift, *, tm):
    Mp, Kp = patches.shape
    cout = w.shape[1]
    out_struct = jax.ShapeDtypeStruct((Mp, cout), jnp.float32)
    return pl.pallas_call(
        _conv_bn_crelu_kernel,
        out_shape=(out_struct, out_struct),
        grid_spec=pltpu.PrefetchScalarGridSpec(
            num_scalar_prefetch=0,
            grid=(Mp // tm,),
            in_specs=[
                pl.BlockSpec((tm, Kp), lambda i: (i, 0)),      # pipelined over M
                pl.BlockSpec((Kp, cout), lambda i: (0, 0)),    # resident
                pl.BlockSpec((1, cout), lambda i: (0, 0)),     # resident
            ],
            out_specs=(pl.BlockSpec((tm, cout), lambda i: (i, 0)),
                       pl.BlockSpec((tm, cout), lambda i: (i, 0))),
        ),
        compiler_params=pltpu.CompilerParams(
            dimension_semantics=("parallel",)),
    )(patches, w, shift)


def maxpool_pair(win_pos, win_neg, *, tm):
    kk, Mp, C = win_pos.shape
    out_struct = jax.ShapeDtypeStruct((Mp, C), jnp.float32)
    return pl.pallas_call(
        functools.partial(_maxpool_pair_kernel, kk=kk),
        out_shape=(out_struct, out_struct),
        grid_spec=pltpu.PrefetchScalarGridSpec(
            num_scalar_prefetch=0,
            grid=(Mp // tm,),
            in_specs=[pl.BlockSpec((kk, tm, C), lambda i: (0, i, 0)),
                      pl.BlockSpec((kk, tm, C), lambda i: (0, i, 0))],
            out_specs=(pl.BlockSpec((tm, C), lambda i: (i, 0)),
                       pl.BlockSpec((tm, C), lambda i: (i, 0))),
        ),
        compiler_params=pltpu.CompilerParams(
            dimension_semantics=("parallel",)),
    )(win_pos, win_neg)


# ----------------------------------------------------------------------------
# Plain-JAX glue: shifted-slab extraction (NHWC, no big transposes)
# ----------------------------------------------------------------------------
def _shifted_slabs(xp, k, stride, oh, ow):
    slabs = []
    for ky in range(k):
        for kx in range(k):
            slabs.append(
                xp[:, ky:ky + stride * (oh - 1) + 1:stride,
                      kx:kx + stride * (ow - 1) + 1:stride, :])
    return slabs


def _im2col(parts, k, stride, pad):
    """im2col over a list of NHWC tensors; per (ky,kx) the parts' channels are
    concatenated in order, so the K-axis ordering is (kh, kw, cin)."""
    N, H, W, _ = parts[0].shape
    OH = (H + 2 * pad - k) // stride + 1
    OW = (W + 2 * pad - k) // stride + 1
    padded = [jnp.pad(p, ((0, 0), (pad, pad), (pad, pad), (0, 0))) for p in parts]
    slabs = []
    for ky in range(k):
        for kx in range(k):
            for p in padded:
                slabs.append(
                    p[:, ky:ky + stride * (OH - 1) + 1:stride,
                         kx:kx + stride * (OW - 1) + 1:stride, :])
    patches = jnp.concatenate(slabs, axis=-1)
    return patches, OH, OW


def conv_layer(parts, w_oihw, bias, gamma, beta, r_mean, r_var,
               *, k, stride, pad, tm=512):
    """conv(k,stride,pad) + BN(eval) + CReLU.

    `parts` is a list of NHWC tensors whose channels concatenate to the conv's
    input channels (in PyTorch order).  Returns (relu(y), relu(-y)) in NHWC.
    """
    N = parts[0].shape[0]
    Cout, Cin = w_oihw.shape[0], w_oihw.shape[1]
    eps = 1e-5

    patches, OH, OW = _im2col(parts, k, stride, pad)
    K = k * k * Cin
    M = N * OH * OW
    patches = patches.reshape(M, K)

    # Pad K to a lane multiple and M rows to the tile size.
    Kp = _round_up(K, 128)
    TM = min(tm, _round_up(M, 8))
    Mp = _round_up(M, TM)
    patches = jnp.pad(patches, ((0, Mp - M), (0, Kp - K)))

    # PyTorch weight [Cout, Cin, KH, KW] -> [KH, KW, Cin, Cout] -> [K, Cout]
    w_mat = jnp.transpose(w_oihw, (2, 3, 1, 0)).reshape(K, Cout)
    scale = gamma / jnp.sqrt(r_var + eps)
    shift = (bias - r_mean) * scale + beta
    w_mat = w_mat * scale[None, :]                 # fold BN scale into weights
    w_mat = jnp.pad(w_mat, ((0, Kp - K), (0, 0)))
    shift = shift.reshape(1, Cout)

    pos, neg = conv_bn_crelu(
        patches.astype(jnp.bfloat16),
        w_mat.astype(jnp.bfloat16),
        shift.astype(jnp.float32),
        tm=TM,
    )
    pos = pos[:M].reshape(N, OH, OW, Cout)
    neg = neg[:M].reshape(N, OH, OW, Cout)
    return pos, neg


def maxpool_pair_layer(pos, neg, *, k, stride, pad, tm=512):
    """MaxPool2d(k,stride,pad) applied to both CReLU halves in one kernel."""
    N, H, W, C = pos.shape
    OH = (H + 2 * pad - k) // stride + 1
    OW = (W + 2 * pad - k) // stride + 1
    M = N * OH * OW
    TM = min(tm, _round_up(M, 8))
    Mp = _round_up(M, TM)

    def windows(x):
        xp = jnp.pad(x, ((0, 0), (pad, pad), (pad, pad), (0, 0)),
                     constant_values=-jnp.inf)
        win = jnp.stack(_shifted_slabs(xp, k, stride, OH, OW), axis=0)
        win = win.reshape(k * k, M, C)
        return jnp.pad(win, ((0, 0), (0, Mp - M), (0, 0)))

    op, on = maxpool_pair(windows(pos).astype(jnp.float32),
                          windows(neg).astype(jnp.float32), tm=TM)
    op = op[:M].reshape(N, OH, OW, C)
    on = on[:M].reshape(N, OH, OW, C)
    return op, on


# ----------------------------------------------------------------------------
# RDCL forward
# ----------------------------------------------------------------------------
def rdcl_forward(x_nchw, params):
    x = jnp.transpose(x_nchw, (0, 2, 3, 1))  # NCHW -> NHWC

    # conv1: 3 -> 24, k7, s4, p3 (+BN) then CReLU -> (24, 24) halves
    pos, neg = conv_layer([x], *params["conv1"], k=7, stride=4, pad=3)
    # pool1: k3, s2, p1
    pos, neg = maxpool_pair_layer(pos, neg, k=3, stride=2, pad=1)
    # conv2: 48 -> 64, k5, s2, p2 (+BN) then CReLU -> (64, 64) halves
    pos, neg = conv_layer([pos, neg], *params["conv2"], k=5, stride=2, pad=2)
    # pool2: k3, s2, p1
    pos, neg = maxpool_pair_layer(pos, neg, k=3, stride=2, pad=1)

    out = jnp.concatenate([pos, neg], axis=-1)  # [relu(y) | relu(-y)] channels
    return jnp.transpose(out, (0, 3, 1, 2))     # NHWC -> NCHW


def make_params(key):
    def conv_params(key, cout, cin, k):
        k1, k2, k3, k4, k5, k6 = jax.random.split(key, 6)
        w = jax.random.normal(k1, (cout, cin, k, k), jnp.float32) * 0.05
        b = jax.random.normal(k2, (cout,), jnp.float32) * 0.05
        gamma = 1.0 + 0.1 * jax.random.normal(k3, (cout,), jnp.float32)
        beta = 0.1 * jax.random.normal(k4, (cout,), jnp.float32)
        r_mean = 0.1 * jax.random.normal(k5, (cout,), jnp.float32)
        r_var = 1.0 + 0.1 * jnp.abs(jax.random.normal(k6, (cout,), jnp.float32))
        return (w, b, gamma, beta, r_mean, r_var)

    k1, k2 = jax.random.split(key)
    return {
        "conv1": conv_params(k1, 24, 3, 7),
        "conv2": conv_params(k2, 64, 48, 5),
    }


if __name__ == "__main__":
    key = jax.random.PRNGKey(0)
    k_params, k_input = jax.random.split(key)

    params = make_params(k_params)
    x = jax.random.normal(k_input, (2, 3, 32, 32), jnp.float32)  # NCHW

    out = jax.jit(rdcl_forward)(x, params)
    out = jax.block_until_ready(out)

    assert out.shape == (2, 128, 1, 1), out.shape
    assert jnp.all(jnp.isfinite(out))
    print("KERNEL_OK")
</pallas_src>

<mosaic_0001>
module attributes {stable_mosaic.version = 11 : i64} {
  func.func @_conv_bn_crelu_kernel(%arg0: i32, %arg1: memref<128x256xbf16, #tpu.memory_space<vmem>>, %arg2: memref<256x24xbf16, #tpu.memory_space<vmem>>, %arg3: memref<1x24xf32, #tpu.memory_space<vmem>>, %arg4: memref<128x24xf32, #tpu.memory_space<vmem>>, %arg5: memref<128x24xf32, #tpu.memory_space<vmem>>) attributes {dimension_semantics = [#tpu.dimension_semantics<parallel>], iteration_bounds = array<i64: 1>, scalar_prefetch = 0 : i64, scratch_operands = 0 : i64, tpu.core_type = #tpu.core_type<tc>, window_params = [{transform_indices = @transform_0, window_bounds = array<i64: 128, 256>}, {pipeline_mode = #tpu.pipeline_mode<synchronous>, transform_indices = @transform_1, window_bounds = array<i64: 256, 24>}, {pipeline_mode = #tpu.pipeline_mode<synchronous>, transform_indices = @transform_2, window_bounds = array<i64: 1, 24>}, {transform_indices = @transform_3, window_bounds = array<i64: 128, 24>}, {transform_indices = @transform_4, window_bounds = array<i64: 128, 24>}]} {
    %c0 = arith.constant 0 : index
    %c0_0 = arith.constant 0 : index
    %0 = vector.load %arg1[%c0, %c0_0] : memref<128x256xbf16, #tpu.memory_space<vmem>>, vector<128x256xbf16>
    %c0_1 = arith.constant 0 : index
    %c0_2 = arith.constant 0 : index
    %1 = vector.load %arg2[%c0_1, %c0_2] : memref<256x24xbf16, #tpu.memory_space<vmem>>, vector<256x24xbf16>
    %cst = arith.constant dense<0.000000e+00> : vector<128x24xf32>
    %2 = tpu.matmul %0, %1, %cst {dimension_numbers = #tpu.dot_dimension_numbers<[1], [0], [0], [1], [0, 0, 1, 1], [], []>} : vector<128x256xbf16>, vector<256x24xbf16>, vector<128x24xf32> -> vector<128x24xf32>
    %c0_3 = arith.constant 0 : index
    %c0_4 = arith.constant 0 : index
    %3 = vector.load %arg3[%c0_3, %c0_4] : memref<1x24xf32, #tpu.memory_space<vmem>>, vector<1x24xf32>
    %4 = vector.broadcast %3 : vector<1x24xf32> to vector<128x24xf32>
    %5 = arith.addf %2, %4 : vector<128x24xf32>
    %cst_5 = arith.constant 0.000000e+00 : f32
    %6 = vector.broadcast %cst_5 : f32 to vector<128x24xf32>
    %7 = arith.maximumf %5, %6 : vector<128x24xf32>
    %c0_6 = arith.constant 0 : index
    %c0_7 = arith.constant 0 : index
    %8 = vector.load %arg4[%c0_6, %c0_7] : memref<128x24xf32, #tpu.memory_space<vmem>>, vector<128x24xf32>
    tpu.vector_store %arg4[%c0_6, %c0_7], %7 {strides = array<i32>} : memref<128x24xf32, #tpu.memory_space<vmem>>, vector<128x24xf32>,
    %cst_8 = arith.constant 0.000000e+00 : f32
    %9 = vector.broadcast %cst_8 : f32 to vector<128x24xf32>
    %10 = arith.subf %9, %5 : vector<128x24xf32>
    %cst_9 = arith.constant 0.000000e+00 : f32
    %11 = vector.broadcast %cst_9 : f32 to vector<128x24xf32>
    %12 = arith.maximumf %10, %11 : vector<128x24xf32>
    %c0_10 = arith.constant 0 : index
    %c0_11 = arith.constant 0 : index
    %13 = vector.load %arg5[%c0_10, %c0_11] : memref<128x24xf32, #tpu.memory_space<vmem>>, vector<128x24xf32>
    tpu.vector_store %arg5[%c0_10, %c0_11], %12 {strides = array<i32>} : memref<128x24xf32, #tpu.memory_space<vmem>>, vector<128x24xf32>,
    return
  }
  func.func @transform_0(%arg0: i32) -> (i32, i32) {
    %c0_i32 = arith.constant 0 : i32
    %c0_i32_0 = arith.constant 0 : i32
    return %arg0, %c0_i32 : i32, i32
  }
  func.func @transform_1(%arg0: i32) -> (i32, i32) {
    %c0_i32 = arith.constant 0 : i32
    %c0_i32_0 = arith.constant 0 : i32
    %c0_i32_1 = arith.constant 0 : i32
    return %c0_i32, %c0_i32_0 : i32, i32
  }
  func.func @transform_2(%arg0: i32) -> (i32, i32) {
    %c0_i32 = arith.constant 0 : i32
    %c0_i32_0 = arith.constant 0 : i32
    %c0_i32_1 = arith.constant 0 : i32
    return %c0_i32, %c0_i32_0 : i32, i32
  }
  func.func @transform_3(%arg0: i32) -> (i32, i32) {
    %c0_i32 = arith.constant 0 : i32
    %c0_i32_0 = arith.constant 0 : i32
    return %arg0, %c0_i32 : i32, i32
  }
  func.func @transform_4(%arg0: i32) -> (i32, i32) {
    %c0_i32 = arith.constant 0 : i32
    %c0_i32_0 = arith.constant 0 : i32
    return %arg0, %c0_i32 : i32, i32
  }
}

module attributes {stable_mosaic.version = 11 : i64} {
  func.func @_maxpool_pair_kernel(%arg0: i32, %arg1: memref<9x32x24xf32, #tpu.memory_space<vmem>>, %arg2: memref<9x32x24xf32, #tpu.memory_space<vmem>>, %arg3: memref<32x24xf32, #tpu.memory_space<vmem>>, %arg4: memref<32x24xf32, #tpu.memory_space<vmem>>) attributes {dimension_semantics = [#tpu.dimension_semantics<parallel>], iteration_bounds = array<i64: 1>, scalar_prefetch = 0 : i64, scratch_operands = 0 : i64, tpu.core_type = #tpu.core_type<tc>, window_params = [{transform_indices = @transform_0, window_bounds = array<i64: 9, 32, 24>}, {transform_indices = @transform_1, window_bounds = array<i64: 9, 32, 24>}, {transform_indices = @transform_2, window_bounds = array<i64: 32, 24>}, {transform_indices = @transform_3, window_bounds = array<i64: 32, 24>}]} {
    %c0 = arith.constant 0 : index
    %c0_0 = arith.constant 0 : index
    %c0_1 = arith.constant 0 : index
    %0 = vector.load %arg1[%c0, %c0_0, %c0_1] : memref<9x32x24xf32, #tpu.memory_space<vmem>>, vector<1x32x24xf32>
    %1 = vector.shape_cast %0 : vector<1x32x24xf32> to vector<32x24xf32>
    %c0_2 = arith.constant 0 : index
    %c0_3 = arith.constant 0 : index
    %c0_4 = arith.constant 0 : index
    %2 = vector.load %arg2[%c0_2, %c0_3, %c0_4] : memref<9x32x24xf32, #tpu.memory_space<vmem>>, vector<1x32x24xf32>
    %3 = vector.shape_cast %2 : vector<1x32x24xf32> to vector<32x24xf32>
    %c1 = arith.constant 1 : index
    %c0_5 = arith.constant 0 : index
    %c0_6 = arith.constant 0 : index
    %4 = vector.load %arg1[%c1, %c0_5, %c0_6] : memref<9x32x24xf32, #tpu.memory_space<vmem>>, vector<1x32x24xf32>
    %5 = vector.shape_cast %4 : vector<1x32x24xf32> to vector<32x24xf32>
    %6 = arith.maximumf %1, %5 : vector<32x24xf32>
    %c1_7 = arith.constant 1 : index
    %c0_8 = arith.constant 0 : index
    %c0_9 = arith.constant 0 : index
    %7 = vector.load %arg2[%c1_7, %c0_8, %c0_9] : memref<9x32x24xf32, #tpu.memory_space<vmem>>, vector<1x32x24xf32>
    %8 = vector.shape_cast %7 : vector<1x32x24xf32> to vector<32x24xf32>
    %9 = arith.maximumf %3, %8 : vector<32x24xf32>
    %c2 = arith.constant 2 : index
    %c0_10 = arith.constant 0 : index
    %c0_11 = arith.constant 0 : index
    %10 = vector.load %arg1[%c2, %c0_10, %c0_11] : memref<9x32x24xf32, #tpu.memory_space<vmem>>, vector<1x32x24xf32>
    %11 = vector.shape_cast %10 : vector<1x32x24xf32> to vector<32x24xf32>
    %12 = arith.maximumf %6, %11 : vector<32x24xf32>
    %c2_12 = arith.constant 2 : index
    %c0_13 = arith.constant 0 : index
    %c0_14 = arith.constant 0 : index
    %13 = vector.load %arg2[%c2_12, %c0_13, %c0_14] : memref<9x32x24xf32, #tpu.memory_space<vmem>>, vector<1x32x24xf32>
    %14 = vector.shape_cast %13 : vector<1x32x24xf32> to vector<32x24xf32>
    %15 = arith.maximumf %9, %14 : vector<32x24xf32>
    %c3 = arith.constant 3 : index
    %c0_15 = arith.constant 0 : index
    %c0_16 = arith.constant 0 : index
    %16 = vector.load %arg1[%c3, %c0_15, %c0_16] : memref<9x32x24xf32, #tpu.memory_space<vmem>>, vector<1x32x24xf32>
    %17 = vector.shape_cast %16 : vector<1x32x24xf32> to vector<32x24xf32>
    %18 = arith.maximumf %12, %17 : vector<32x24xf32>
    %c3_17 = arith.constant 3 : index
    %c0_18 = arith.constant 0 : index
    %c0_19 = arith.constant 0 : index
    %19 = vector.load %arg2[%c3_17, %c0_18, %c0_19] : memref<9x32x24xf32, #tpu.memory_space<vmem>>, vector<1x32x24xf32>
    %20 = vector.shape_cast %19 : vector<1x32x24xf32> to vector<32x24xf32>
    %21 = arith.maximumf %15, %20 : vector<32x24xf32>
    %c4 = arith.constant 4 : index
    %c0_20 = arith.constant 0 : index
    %c0_21 = arith.constant 0 : index
    %22 = vector.load %arg1[%c4, %c0_20, %c0_21] : memref<9x32x24xf32, #tpu.memory_space<vmem>>, vector<1x32x24xf32>
    %23 = vector.shape_cast %22 : vector<1x32x24xf32> to vector<32x24xf32>
    %24 = arith.maximumf %18, %23 : vector<32x24xf32>
    %c4_22 = arith.constant 4 : index
    %c0_23 = arith.constant 0 : index
    %c0_24 = arith.constant 0 : index
    %25 = vector.load %arg2[%c4_22, %c0_23, %c0_24] : memref<9x32x24xf32, #tpu.memory_space<vmem>>, vector<1x32x24xf32>
    %26 = vector.shape_cast %25 : vector<1x32x24xf32> to vector<32x24xf32>
    %27 = arith.maximumf %21, %26 : vector<32x24xf32>
    %c5 = arith.constant 5 : index
    %c0_25 = arith.constant 0 : index
    %c0_26 = arith.constant 0 : index
    %28 = vector.load %arg1[%c5, %c0_25, %c0_26] : memref<9x32x24xf32, #tpu.memory_space<vmem>>, vector<1x32x24xf32>
    %29 = vector.shape_cast %28 : vector<1x32x24xf32> to vector<32x24xf32>
    %30 = arith.maximumf %24, %29 : vector<32x24xf32>
    %c5_27 = arith.constant 5 : index
    %c0_28 = arith.constant 0 : index
    %c0_29 = arith.constant 0 : index
    %31 = vector.load %arg2[%c5_27, %c0_28, %c0_29] : memref<9x32x24xf32, #tpu.memory_space<vmem>>, vector<1x32x24xf32>
    %32 = vector.shape_cast %31 : vector<1x32x24xf32> to vector<32x24xf32>
    %33 = arith.maximumf %27, %32 : vector<32x24xf32>
    %c6 = arith.constant 6 : index
    %c0_30 = arith.constant 0 : index
    %c0_31 = arith.constant 0 : index
    %34 = vector.load %arg1[%c6, %c0_30, %c0_31] : memref<9x32x24xf32, #tpu.memory_space<vmem>>, vector<1x32x24xf32>
    %35 = vector.shape_cast %34 : vector<1x32x24xf32> to vector<32x24xf32>
    %36 = arith.maximumf %30, %35 : vector<32x24xf32>
    %c6_32 = arith.constant 6 : index
    %c0_33 = arith.constant 0 : index
    %c0_34 = arith.constant 0 : index
    %37 = vector.load %arg2[%c6_32, %c0_33, %c0_34] : memref<9x32x24xf32, #tpu.memory_space<vmem>>, vector<1x32x24xf32>
    %38 = vector.shape_cast %37 : vector<1x32x24xf32> to vector<32x24xf32>
    %39 = arith.maximumf %33, %38 : vector<32x24xf32>
    %c7 = arith.constant 7 : index
    %c0_35 = arith.constant 0 : index
    %c0_36 = arith.constant 0 : index
    %40 = vector.load %arg1[%c7, %c0_35, %c0_36] : memref<9x32x24xf32, #tpu.memory_space<vmem>>, vector<1x32x24xf32>
    %41 = vector.shape_cast %40 : vector<1x32x24xf32> to vector<32x24xf32>
    %42 = arith.maximumf %36, %41 : vector<32x24xf32>
    %c7_37 = arith.constant 7 : index
    %c0_38 = arith.constant 0 : index
    %c0_39 = arith.constant 0 : index
    %43 = vector.load %arg2[%c7_37, %c0_38, %c0_39] : memref<9x32x24xf32, #tpu.memory_space<vmem>>, vector<1x32x24xf32>
    %44 = vector.shape_cast %43 : vector<1x32x24xf32> to vector<32x24xf32>
    %45 = arith.maximumf %39, %44 : vector<32x24xf32>
    %c8 = arith.constant 8 : index
    %c0_40 = arith.constant 0 : index
    %c0_41 = arith.constant 0 : index
    %46 = vector.load %arg1[%c8, %c0_40, %c0_41] : memref<9x32x24xf32, #tpu.memory_space<vmem>>, vector<1x32x24xf32>
    %47 = vector.shape_cast %46 : vector<1x32x24xf32> to vector<32x24xf32>
    %48 = arith.maximumf %42, %47 : vector<32x24xf32>
    %c8_42 = arith.constant 8 : index
    %c0_43 = arith.constant 0 : index
    %c0_44 = arith.constant 0 : index
    %49 = vector.load %arg2[%c8_42, %c0_43, %c0_44] : memref<9x32x24xf32, #tpu.memory_space<vmem>>, vector<1x32x24xf32>
    %50 = vector.shape_cast %49 : vector<1x32x24xf32> to vector<32x24xf32>
    %51 = arith.maximumf %45, %50 : vector<32x24xf32>
    %c0_45 = arith.constant 0 : index
    %c0_46 = arith.constant 0 : index
    %52 = vector.load %arg3[%c0_45, %c0_46] : memref<32x24xf32, #tpu.memory_space<vmem>>, vector<32x24xf32>
    tpu.vector_store %arg3[%c0_45, %c0_46], %48 {strides = array<i32>} : memref<32x24xf32, #tpu.memory_space<vmem>>, vector<32x24xf32>,
    %c0_47 = arith.constant 0 : index
    %c0_48 = arith.constant 0 : index
    %53 = vector.load %arg4[%c0_47, %c0_48] : memref<32x24xf32, #tpu.memory_space<vmem>>, vector<32x24xf32>
    tpu.vector_store %arg4[%c0_47, %c0_48], %51 {strides = array<i32>} : memref<32x24xf32, #tpu.memory_space<vmem>>, vector<32x24xf32>,
    return
  }
  func.func @transform_0(%arg0: i32) -> (i32, i32, i32) {
    %c0_i32 = arith.constant 0 : i32
    %c0_i32_0 = arith.constant 0 : i32
    %c0_i32_1 = arith.constant 0 : i32
    return %c0_i32, %arg0, %c0_i32_0 : i32, i32, i32
  }
  func.func @transform_1(%arg0: i32) -> (i32, i32, i32) {
    %c0_i32 = arith.constant 0 : i32
    %c0_i32_0 = arith.constant 0 : i32
    %c0_i32_1 = arith.constant 0 : i32
    return %c0_i32, %arg0, %c0_i32_0 : i32, i32, i32
  }
  func.func @transform_2(%arg0: i32) -> (i32, i32) {
    %c0_i32 = arith.constant 0 : i32
    %c0_i32_0 = arith.constant 0 : i32
    return %arg0, %c0_i32 : i32, i32
  }
  func.func @transform_3(%arg0: i32) -> (i32, i32) {
    %c0_i32 = arith.constant 0 : i32
    %c0_i32_0 = arith.constant 0 : i32
    return %arg0, %c0_i32 : i32, i32
  }
}

module attributes {stable_mosaic.version = 11 : i64} {
  func.func @_conv_bn_crelu_kernel(%arg0: i32, %arg1: memref<8x1280xbf16, #tpu.memory_space<vmem>>, %arg2: memref<1280x64xbf16, #tpu.memory_space<vmem>>, %arg3: memref<1x64xf32, #tpu.memory_space<vmem>>, %arg4: memref<8x64xf32, #tpu.memory_space<vmem>>, %arg5: memref<8x64xf32, #tpu.memory_space<vmem>>) attributes {dimension_semantics = [#tpu.dimension_semantics<parallel>], iteration_bounds = array<i64: 1>, scalar_prefetch = 0 : i64, scratch_operands = 0 : i64, tpu.core_type = #tpu.core_type<tc>, window_params = [{transform_indices = @transform_0, window_bounds = array<i64: 8, 1280>}, {pipeline_mode = #tpu.pipeline_mode<synchronous>, transform_indices = @transform_1, window_bounds = array<i64: 1280, 64>}, {pipeline_mode = #tpu.pipeline_mode<synchronous>, transform_indices = @transform_2, window_bounds = array<i64: 1, 64>}, {transform_indices = @transform_3, window_bounds = array<i64: 8, 64>}, {transform_indices = @transform_4, window_bounds = array<i64: 8, 64>}]} {
    %c0 = arith.constant 0 : index
    %c0_0 = arith.constant 0 : index
    %0 = vector.load %arg1[%c0, %c0_0] : memref<8x1280xbf16, #tpu.memory_space<vmem>>, vector<8x1280xbf16>
    %c0_1 = arith.constant 0 : index
    %c0_2 = arith.constant 0 : index
    %1 = vector.load %arg2[%c0_1, %c0_2] : memref<1280x64xbf16, #tpu.memory_space<vmem>>, vector<1280x64xbf16>
    %cst = arith.constant dense<0.000000e+00> : vector<8x64xf32>
    %2 = tpu.matmul %0, %1, %cst {dimension_numbers = #tpu.dot_dimension_numbers<[1], [0], [0], [1], [0, 0, 1, 1], [], []>} : vector<8x1280xbf16>, vector<1280x64xbf16>, vector<8x64xf32> -> vector<8x64xf32>
    %c0_3 = arith.constant 0 : index
    %c0_4 = arith.constant 0 : index
    %3 = vector.load %arg3[%c0_3, %c0_4] : memref<1x64xf32, #tpu.memory_space<vmem>>, vector<1x64xf32>
    %4 = vector.broadcast %3 : vector<1x64xf32> to vector<8x64xf32>
    %5 = arith.addf %2, %4 : vector<8x64xf32>
    %cst_5 = arith.constant 0.000000e+00 : f32
    %6 = vector.broadcast %cst_5 : f32 to vector<8x64xf32>
    %7 = arith.maximumf %5, %6 : vector<8x64xf32>
    %c0_6 = arith.constant 0 : index
    %c0_7 = arith.constant 0 : index
    %8 = vector.load %arg4[%c0_6, %c0_7] : memref<8x64xf32, #tpu.memory_space<vmem>>, vector<8x64xf32>
    tpu.vector_store %arg4[%c0_6, %c0_7], %7 {strides = array<i32>} : memref<8x64xf32, #tpu.memory_space<vmem>>, vector<8x64xf32>,
    %cst_8 = arith.constant 0.000000e+00 : f32
    %9 = vector.broadcast %cst_8 : f32 to vector<8x64xf32>
    %10 = arith.subf %9, %5 : vector<8x64xf32>
    %cst_9 = arith.constant 0.000000e+00 : f32
    %11 = vector.broadcast %cst_9 : f32 to vector<8x64xf32>
    %12 = arith.maximumf %10, %11 : vector<8x64xf32>
    %c0_10 = arith.constant 0 : index
    %c0_11 = arith.constant 0 : index
    %13 = vector.load %arg5[%c0_10, %c0_11] : memref<8x64xf32, #tpu.memory_space<vmem>>, vector<8x64xf32>
    tpu.vector_store %arg5[%c0_10, %c0_11], %12 {strides = array<i32>} : memref<8x64xf32, #tpu.memory_space<vmem>>, vector<8x64xf32>,
    return
  }
  func.func @transform_0(%arg0: i32) -> (i32, i32) {
    %c0_i32 = arith.constant 0 : i32
    %c0_i32_0 = arith.constant 0 : i32
    return %arg0, %c0_i32 : i32, i32
  }
  func.func @transform_1(%arg0: i32) -> (i32, i32) {
    %c0_i32 = arith.constant 0 : i32
    %c0_i32_0 = arith.constant 0 : i32
    %c0_i32_1 = arith.constant 0 : i32
    return %c0_i32, %c0_i32_0 : i32, i32
  }
  func.func @transform_2(%arg0: i32) -> (i32, i32) {
    %c0_i32 = arith.constant 0 : i32
    %c0_i32_0 = arith.constant 0 : i32
    %c0_i32_1 = arith.constant 0 : i32
    return %c0_i32, %c0_i32_0 : i32, i32
  }
  func.func @transform_3(%arg0: i32) -> (i32, i32) {
    %c0_i32 = arith.constant 0 : i32
    %c0_i32_0 = arith.constant 0 : i32
    return %arg0, %c0_i32 : i32, i32
  }
  func.func @transform_4(%arg0: i32) -> (i32, i32) {
    %c0_i32 = arith.constant 0 : i32
    %c0_i32_0 = arith.constant 0 : i32
    return %arg0, %c0_i32 : i32, i32
  }
}

module attributes {stable_mosaic.version = 11 : i64} {
  func.func @_maxpool_pair_kernel(%arg0: i32, %arg1: memref<9x8x64xf32, #tpu.memory_space<vmem>>, %arg2: memref<9x8x64xf32, #tpu.memory_space<vmem>>, %arg3: memref<8x64xf32, #tpu.memory_space<vmem>>, %arg4: memref<8x64xf32, #tpu.memory_space<vmem>>) attributes {dimension_semantics = [#tpu.dimension_semantics<parallel>], iteration_bounds = array<i64: 1>, scalar_prefetch = 0 : i64, scratch_operands = 0 : i64, tpu.core_type = #tpu.core_type<tc>, window_params = [{transform_indices = @transform_0, window_bounds = array<i64: 9, 8, 64>}, {transform_indices = @transform_1, window_bounds = array<i64: 9, 8, 64>}, {transform_indices = @transform_2, window_bounds = array<i64: 8, 64>}, {transform_indices = @transform_3, window_bounds = array<i64: 8, 64>}]} {
    %c0 = arith.constant 0 : index
    %c0_0 = arith.constant 0 : index
    %c0_1 = arith.constant 0 : index
    %0 = vector.load %arg1[%c0, %c0_0, %c0_1] : memref<9x8x64xf32, #tpu.memory_space<vmem>>, vector<1x8x64xf32>
    %1 = vector.shape_cast %0 : vector<1x8x64xf32> to vector<8x64xf32>
    %c0_2 = arith.constant 0 : index
    %c0_3 = arith.constant 0 : index
    %c0_4 = arith.constant 0 : index
    %2 = vector.load %arg2[%c0_2, %c0_3, %c0_4] : memref<9x8x64xf32, #tpu.memory_space<vmem>>, vector<1x8x64xf32>
    %3 = vector.shape_cast %2 : vector<1x8x64xf32> to vector<8x64xf32>
    %c1 = arith.constant 1 : index
    %c0_5 = arith.constant 0 : index
    %c0_6 = arith.constant 0 : index
    %4 = vector.load %arg1[%c1, %c0_5, %c0_6] : memref<9x8x64xf32, #tpu.memory_space<vmem>>, vector<1x8x64xf32>
    %5 = vector.shape_cast %4 : vector<1x8x64xf32> to vector<8x64xf32>
    %6 = arith.maximumf %1, %5 : vector<8x64xf32>
    %c1_7 = arith.constant 1 : index
    %c0_8 = arith.constant 0 : index
    %c0_9 = arith.constant 0 : index
    %7 = vector.load %arg2[%c1_7, %c0_8, %c0_9] : memref<9x8x64xf32, #tpu.memory_space<vmem>>, vector<1x8x64xf32>
    %8 = vector.shape_cast %7 : vector<1x8x64xf32> to vector<8x64xf32>
    %9 = arith.maximumf %3, %8 : vector<8x64xf32>
    %c2 = arith.constant 2 : index
    %c0_10 = arith.constant 0 : index
    %c0_11 = arith.constant 0 : index
    %10 = vector.load %arg1[%c2, %c0_10, %c0_11] : memref<9x8x64xf32, #tpu.memory_space<vmem>>, vector<1x8x64xf32>
    %11 = vector.shape_cast %10 : vector<1x8x64xf32> to vector<8x64xf32>
    %12 = arith.maximumf %6, %11 : vector<8x64xf32>
    %c2_12 = arith.constant 2 : index
    %c0_13 = arith.constant 0 : index
    %c0_14 = arith.constant 0 : index
    %13 = vector.load %arg2[%c2_12, %c0_13, %c0_14] : memref<9x8x64xf32, #tpu.memory_space<vmem>>, vector<1x8x64xf32>
    %14 = vector.shape_cast %13 : vector<1x8x64xf32> to vector<8x64xf32>
    %15 = arith.maximumf %9, %14 : vector<8x64xf32>
    %c3 = arith.constant 3 : index
    %c0_15 = arith.constant 0 : index
    %c0_16 = arith.constant 0 : index
    %16 = vector.load %arg1[%c3, %c0_15, %c0_16] : memref<9x8x64xf32, #tpu.memory_space<vmem>>, vector<1x8x64xf32>
    %17 = vector.shape_cast %16 : vector<1x8x64xf32> to vector<8x64xf32>
    %18 = arith.maximumf %12, %17 : vector<8x64xf32>
    %c3_17 = arith.constant 3 : index
    %c0_18 = arith.constant 0 : index
    %c0_19 = arith.constant 0 : index
    %19 = vector.load %arg2[%c3_17, %c0_18, %c0_19] : memref<9x8x64xf32, #tpu.memory_space<vmem>>, vector<1x8x64xf32>
    %20 = vector.shape_cast %19 : vector<1x8x64xf32> to vector<8x64xf32>
    %21 = arith.maximumf %15, %20 : vector<8x64xf32>
    %c4 = arith.constant 4 : index
    %c0_20 = arith.constant 0 : index
    %c0_21 = arith.constant 0 : index
    %22 = vector.load %arg1[%c4, %c0_20, %c0_21] : memref<9x8x64xf32, #tpu.memory_space<vmem>>, vector<1x8x64xf32>
    %23 = vector.shape_cast %22 : vector<1x8x64xf32> to vector<8x64xf32>
    %24 = arith.maximumf %18, %23 : vector<8x64xf32>
    %c4_22 = arith.constant 4 : index
    %c0_23 = arith.constant 0 : index
    %c0_24 = arith.constant 0 : index
    %25 = vector.load %arg2[%c4_22, %c0_23, %c0_24] : memref<9x8x64xf32, #tpu.memory_space<vmem>>, vector<1x8x64xf32>
    %26 = vector.shape_cast %25 : vector<1x8x64xf32> to vector<8x64xf32>
    %27 = arith.maximumf %21, %26 : vector<8x64xf32>
    %c5 = arith.constant 5 : index
    %c0_25 = arith.constant 0 : index
    %c0_26 = arith.constant 0 : index
    %28 = vector.load %arg1[%c5, %c0_25, %c0_26] : memref<9x8x64xf32, #tpu.memory_space<vmem>>, vector<1x8x64xf32>
    %29 = vector.shape_cast %28 : vector<1x8x64xf32> to vector<8x64xf32>
    %30 = arith.maximumf %24, %29 : vector<8x64xf32>
    %c5_27 = arith.constant 5 : index
    %c0_28 = arith.constant 0 : index
    %c0_29 = arith.constant 0 : index
    %31 = vector.load %arg2[%c5_27, %c0_28, %c0_29] : memref<9x8x64xf32, #tpu.memory_space<vmem>>, vector<1x8x64xf32>
    %32 = vector.shape_cast %31 : vector<1x8x64xf32> to vector<8x64xf32>
    %33 = arith.maximumf %27, %32 : vector<8x64xf32>
    %c6 = arith.constant 6 : index
    %c0_30 = arith.constant 0 : index
    %c0_31 = arith.constant 0 : index
    %34 = vector.load %arg1[%c6, %c0_30, %c0_31] : memref<9x8x64xf32, #tpu.memory_space<vmem>>, vector<1x8x64xf32>
    %35 = vector.shape_cast %34 : vector<1x8x64xf32> to vector<8x64xf32>
    %36 = arith.maximumf %30, %35 : vector<8x64xf32>
    %c6_32 = arith.constant 6 : index
    %c0_33 = arith.constant 0 : index
    %c0_34 = arith.constant 0 : index
    %37 = vector.load %arg2[%c6_32, %c0_33, %c0_34] : memref<9x8x64xf32, #tpu.memory_space<vmem>>, vector<1x8x64xf32>
    %38 = vector.shape_cast %37 : vector<1x8x64xf32> to vector<8x64xf32>
    %39 = arith.maximumf %33, %38 : vector<8x64xf32>
    %c7 = arith.constant 7 : index
    %c0_35 = arith.constant 0 : index
    %c0_36 = arith.constant 0 : index
    %40 = vector.load %arg1[%c7, %c0_35, %c0_36] : memref<9x8x64xf32, #tpu.memory_space<vmem>>, vector<1x8x64xf32>
    %41 = vector.shape_cast %40 : vector<1x8x64xf32> to vector<8x64xf32>
    %42 = arith.maximumf %36, %41 : vector<8x64xf32>
    %c7_37 = arith.constant 7 : index
    %c0_38 = arith.constant 0 : index
    %c0_39 = arith.constant 0 : index
    %43 = vector.load %arg2[%c7_37, %c0_38, %c0_39] : memref<9x8x64xf32, #tpu.memory_space<vmem>>, vector<1x8x64xf32>
    %44 = vector.shape_cast %43 : vector<1x8x64xf32> to vector<8x64xf32>
    %45 = arith.maximumf %39, %44 : vector<8x64xf32>
    %c8 = arith.constant 8 : index
    %c0_40 = arith.constant 0 : index
    %c0_41 = arith.constant 0 : index
    %46 = vector.load %arg1[%c8, %c0_40, %c0_41] : memref<9x8x64xf32, #tpu.memory_space<vmem>>, vector<1x8x64xf32>
    %47 = vector.shape_cast %46 : vector<1x8x64xf32> to vector<8x64xf32>
    %48 = arith.maximumf %42, %47 : vector<8x64xf32>
    %c8_42 = arith.constant 8 : index
    %c0_43 = arith.constant 0 : index
    %c0_44 = arith.constant 0 : index
    %49 = vector.load %arg2[%c8_42, %c0_43, %c0_44] : memref<9x8x64xf32, #tpu.memory_space<vmem>>, vector<1x8x64xf32>
    %50 = vector.shape_cast %49 : vector<1x8x64xf32> to vector<8x64xf32>
    %51 = arith.maximumf %45, %50 : vector<8x64xf32>
    %c0_45 = arith.constant 0 : index
    %c0_46 = arith.constant 0 : index
    %52 = vector.load %arg3[%c0_45, %c0_46] : memref<8x64xf32, #tpu.memory_space<vmem>>, vector<8x64xf32>
    tpu.vector_store %arg3[%c0_45, %c0_46], %48 {strides = array<i32>} : memref<8x64xf32, #tpu.memory_space<vmem>>, vector<8x64xf32>,
    %c0_47 = arith.constant 0 : index
    %c0_48 = arith.constant 0 : index
    %53 = vector.load %arg4[%c0_47, %c0_48] : memref<8x64xf32, #tpu.memory_space<vmem>>, vector<8x64xf32>
    tpu.vector_store %arg4[%c0_47, %c0_48], %51 {strides = array<i32>} : memref<8x64xf32, #tpu.memory_space<vmem>>, vector<8x64xf32>,
    return
  }
  func.func @transform_0(%arg0: i32) -> (i32, i32, i32) {
    %c0_i32 = arith.constant 0 : i32
    %c0_i32_0 = arith.constant 0 : i32
    %c0_i32_1 = arith.constant 0 : i32
    return %c0_i32, %arg0, %c0_i32_0 : i32, i32, i32
  }
  func.func @transform_1(%arg0: i32) -> (i32, i32, i32) {
    %c0_i32 = arith.constant 0 : i32
    %c0_i32_0 = arith.constant 0 : i32
    %c0_i32_1 = arith.constant 0 : i32
    return %c0_i32, %arg0, %c0_i32_0 : i32, i32, i32
  }
  func.func @transform_2(%arg0: i32) -> (i32, i32) {
    %c0_i32 = arith.constant 0 : i32
    %c0_i32_0 = arith.constant 0 : i32
    return %arg0, %c0_i32 : i32, i32
  }
  func.func @transform_3(%arg0: i32) -> (i32, i32) {
    %c0_i32 = arith.constant 0 : i32
    %c0_i32_0 = arith.constant 0 : i32
    return %arg0, %c0_i32 : i32, i32
  }
}

</mosaic_0001>

<bundles_post_ra>
// kernel: rdcl_forward.5
= control target key start
LH: loop header
LB: loop body
LE: loop exit
PB: predicated region body
PF: predicated region fallthrough
CT: control target
= control target key end

     0   :  { %vm165_vm0 = vcmask 195584   ;;  %s514_s0 = inlined_call_operand.vmem [shape: f32[9,32,24], index: 0, kind: input, shape index: {}]   ;;  %s515_s1 = inlined_call_operand.vmem [shape: f32[9,32,24], index: 1, kind: input, shape index: {}]   ;;  %s516_s2 = inlined_call_operand.vmem [shape: f32[32,24], index: 2, kind: output, shape index: {0}]   ;;  %s517_s3 = inlined_call_operand.vmem [shape: f32[32,24], index: 3, kind: output, shape index: {1}]  }
   0x1   :  { %v13_v0 = vld [vmem:[%s514_s0] sm:$0xff]  ;;  %v14_v6 = vld [vmem:[%s514_s0 + $0x8] sm:$0xff]  ;;  %v15_v15 = vld [vmem:[%s514_s0 + $0x10] sm:$0xff] }
   0x2   :  { %v182_v1 = vld [vmem:[%s514_s0 + $0x20] sm:$0xff]  ;;  %v183_v7 = vld [vmem:[%s514_s0 + $0x28] sm:$0xff]  ;;  %v184_v16 = vld [vmem:[%s514_s0 + $0x30] sm:$0xff] }
   0x3   :  { %v190_v2 = vld [vmem:[%s514_s0 + $0x40] sm:$0xff]  ;;  %v26_v3 = vmax.f32 %v13_v0, %v182_v1  ;;  %v191_v8 = vld [vmem:[%s514_s0 + $0x48] sm:$0xff]  ;;  %v27_v10 = vmax.f32 %v14_v6, %v183_v7  ;;  %v192_v17 = vld [vmem:[%s514_s0 + $0x50] sm:$0xff]  ;;  %v28_v20 = vmax.f32 %v15_v15, %v184_v16 }
   0x4   :  { %v198_v4 = vld [vmem:[%s514_s0 + $0x60] sm:$0xff]  ;;  %v199_v13 = vld [vmem:[%s514_s0 + $0x68] sm:$0xff]  ;;  %v200_v24 = vld [vmem:[%s514_s0 + $0x70] sm:$0xff] }
   0x5   :  { %v44_v5 = vmax.f32 %v26_v3, %v190_v2  ;;  %v206_v9 = vld [vmem:[%s514_s0 + $0x80] sm:$0xff]  ;;  %v45_v14 = vmax.f32 %v27_v10, %v191_v8  ;;  %v207_v19 = vld [vmem:[%s514_s0 + $0x88] sm:$0xff]  ;;  %v46_v26 = vmax.f32 %v28_v20, %v192_v17  ;;  %v16_v27 = vld [vmem:[%s514_s0 + $0x18] sm:$0xff] }
   0x6   :  { %v214_v12 = vld [vmem:[%s514_s0 + $0xa0] sm:$0xff]  ;;  %v215_v23 = vld [vmem:[%s514_s0 + $0xa8] sm:$0xff]  ;;  %v185_v28 = vld [vmem:[%s514_s0 + $0x38] sm:$0xff] }
   0x7   :  { %v62_v11 = vmax.f32 %v44_v5, %v198_v4  ;;  %v222_v21 = vld [vmem:[%s514_s0 + $0xc0] sm:$0xff]  ;;  %v63_v22 = vmax.f32 %v45_v14, %v199_v13  ;;  %v193_v29 = vld [vmem:[%s514_s0 + $0x58] sm:$0xff]  ;;  %v208_v33 = vld [vmem:[%s514_s0 + $0x90] sm:$0xff]  ;;  %v29_v34 = vmax.f32 %v16_v27, %v185_v28  ;;  %v64_v37 = vmax.f32 %v46_v26, %v200_v24 }
   0x8   :  { %v230_v30 = vld [vmem:[%s514_s0 + $0xe0] sm:$0xff]  ;;  %v223_v36 = vld [vmem:[%s514_s0 + $0xc8] sm:$0xff]  ;;  %v216_v38 = vld [vmem:[%s514_s0 + $0xb0] sm:$0xff] }
   0x9   :  { %v80_v18 = vmax.f32 %v62_v11, %v206_v9  ;;  %v238_v31 = vld [vmem:[%s514_s0 + $0x100] sm:$0xff]  ;;  %v81_v32 = vmax.f32 %v63_v22, %v207_v19  ;;  %v201_v39 = vld [vmem:[%s514_s0 + $0x78] sm:$0xff]  ;;  %v47_v41 = vmax.f32 %v29_v34, %v193_v29  ;;  %v231_v46 = vld [vmem:[%s514_s0 + $0xe8] sm:$0xff]  ;;  %v82_v48 = vmax.f32 %v64_v37, %v208_v33 }
   0xa   :  { %v17_v42 = vld [vmem:[%s515_s1] sm:$0xff]  ;;  %v239_v47 = vld [vmem:[%s514_s0 + $0x108] sm:$0xff]  ;;  %v209_v49 = vld [vmem:[%s514_s0 + $0x98] sm:$0xff] }
   0xb   :  { %v98_v25 = vmax.f32 %v80_v18, %v214_v12  ;;  %v99_v40 = vmax.f32 %v81_v32, %v215_v23  ;;  %v186_v43 = vld [vmem:[%s515_s1 + $0x20] sm:$0xff]  ;;  %v224_v52 = vld [vmem:[%s514_s0 + $0xd0] sm:$0xff]  ;;  %v65_v53 = vmax.f32 %v47_v41, %v201_v39  ;;  %v217_v54 = vld [vmem:[%s514_s0 + $0xb8] sm:$0xff]  ;;  %v100_v57 = vmax.f32 %v82_v48, %v216_v38 }
   0xc   :  { %v194_v44 = vld [vmem:[%s515_s1 + $0x40] sm:$0xff]  ;;  %v35_v50 = vmax.f32 %v17_v42, %v186_v43  ;;  %v18_v59 = vld [vmem:[%s515_s1 + $0x8] sm:$0xff]  ;;  %v232_v63 = vld [vmem:[%s514_s0 + $0xf0] sm:$0xff] }
   0xd   :  { %v116_v35 = vmax.f32 %v98_v25, %v222_v21  ;;  %v117_v51 = vmax.f32 %v99_v40, %v223_v36  ;;  %v202_v55 = vld [vmem:[%s515_s1 + $0x60] sm:$0xff]  ;;  %v187_v60 = vld [vmem:[%s515_s1 + $0x28] sm:$0xff]  ;;  %v240_v0 = vld [vmem:[%s514_s0 + $0x110] sm:$0xff]  ;;  %v83_v1 = vmax.f32 %v65_v53, %v209_v49  ;;  %v118_v4 = vmax.f32 %v100_v57, %v224_v52 }
   0xe   :  { %v53_v58 = vmax.f32 %v35_v50, %v194_v44  ;;  %v195_v61 = vld [vmem:[%s515_s1 + $0x48] sm:$0xff]  ;;  %v210_v2 = vld [vmem:[%s515_s1 + $0x80] sm:$0xff]  ;;  %v36_v3 = vmax.f32 %v18_v59, %v187_v60  ;;  %v225_v5 = vld [vmem:[%s514_s0 + $0xd8] sm:$0xff] }
   0xf   :  { %v134_v45 = vmax.f32 %v116_v35, %v230_v30  ;;  %v135_v62 = vmax.f32 %v117_v51, %v231_v46  ;;  %v218_v7 = vld [vmem:[%s515_s1 + $0xa0] sm:$0xff]  ;;  %v203_v8 = vld [vmem:[%s515_s1 + $0x68] sm:$0xff]  ;;  %v101_v10 = vmax.f32 %v83_v1, %v217_v54  ;;  %v19_v12 = vld [vmem:[%s515_s1 + $0x10] sm:$0xff]  ;;  %v136_v15 = vmax.f32 %v118_v4, %v232_v63 }
  0x10   :  { %v71_v6 = vmax.f32 %v53_v58, %v202_v55  ;;  %v54_v11 = vmax.f32 %v36_v3, %v195_v61  ;;  %v188_v13 = vld [vmem:[%s515_s1 + $0x30] sm:$0xff]  ;;  %v233_v16 = vld [vmem:[%s514_s0 + $0xf8] sm:$0xff]  ;;  %v211_v19 = vld [vmem:[%s515_s1 + $0x88] sm:$0xff] }
  0x11   :  { %v152_v56 = vmax.f32 %v134_v45, %v238_v31  ;;  %v153_v9 = vmax.f32 %v135_v62, %v239_v47  ;;  %v196_v14 = vld [vmem:[%s515_s1 + $0x50] sm:$0xff]  ;;  %v241_v17 = vld [vmem:[%s514_s0 + $0x118] sm:$0xff]  ;;  %v37_v20 = vmax.f32 %v19_v12, %v188_v13  ;;  %v119_v21 = vmax.f32 %v101_v10, %v225_v5  ;;  %v226_v22 = vld [vmem:[%s515_s1 + $0xc0] sm:$0xff] }
  0x12   :  { %v89_v18 = vmax.f32 %v71_v6, %v210_v2  ;;  %v72_v23 = vmax.f32 %v54_v11, %v203_v8  ;;  %v219_v24 = vld [vmem:[%s515_s1 + $0xa8] sm:$0xff]  ;;  %v204_v25 = vld [vmem:[%s515_s1 + $0x70] sm:$0xff]  ;;  %v154_v26 = vmax.f32 %v136_v15, %v240_v0  ;;  %v20_v29 = vld [vmem:[%s515_s1 + $0x18] sm:$0xff] }
  0x13   :  { %166 = vst.msk [vmem:[%s516_s2] sm:$0xff] %vm165_vm0, %v152_v56  ;;  %167 = vst.msk [vmem:[%s516_s2 + $0x8] sm:$0xff] %vm165_vm0, %v153_v9  ;;  %v55_v28 = vmax.f32 %v37_v20, %v196_v14  ;;  %v189_v30 = vld [vmem:[%s515_s1 + $0x38] sm:$0xff]  ;;  %v137_v32 = vmax.f32 %v119_v21, %v233_v16  ;;  %v234_v33 = vld [vmem:[%s515_s1 + $0xe0] sm:$0xff] }
  0x14   :  { %v107_v27 = vmax.f32 %v89_v18, %v218_v7  ;;  %v197_v31 = vld [vmem:[%s515_s1 + $0x58] sm:$0xff]  ;;  %v90_v34 = vmax.f32 %v72_v23, %v211_v19  ;;  %v212_v35 = vld [vmem:[%s515_s1 + $0x90] sm:$0xff]  ;;  %v38_v36 = vmax.f32 %v20_v29, %v189_v30  ;;  %168 = vst.msk [vmem:[%s516_s2 + $0x10] sm:$0xff] %vm165_vm0, %v154_v26  ;;  %v227_v38 = vld [vmem:[%s515_s1 + $0xc8] sm:$0xff] }
  0x15   :  { %v73_v39 = vmax.f32 %v55_v28, %v204_v25  ;;  %v205_v40 = vld [vmem:[%s515_s1 + $0x78] sm:$0xff]  ;;  %v155_v41 = vmax.f32 %v137_v32, %v241_v17  ;;  %v242_v42 = vld [vmem:[%s515_s1 + $0x100] sm:$0xff]  ;;  %v220_v44 = vld [vmem:[%s515_s1 + $0xb0] sm:$0xff] }
  0x16   :  { %v125_v37 = vmax.f32 %v107_v27, %v226_v22  ;;  %v108_v43 = vmax.f32 %v90_v34, %v219_v24  ;;  %v56_v45 = vmax.f32 %v38_v36, %v197_v31  ;;  %v235_v47 = vld [vmem:[%s515_s1 + $0xe8] sm:$0xff]  ;;  %v213_v49 = vld [vmem:[%s515_s1 + $0x98] sm:$0xff]  ;;  %v228_v51 = vld [vmem:[%s515_s1 + $0xd0] sm:$0xff] }
  0x17   :  { %v91_v48 = vmax.f32 %v73_v39, %v212_v35  ;;  %169 = vst.msk [vmem:[%s516_s2 + $0x18] sm:$0xff] %vm165_vm0, %v155_v41  ;;  %v243_v54 = vld [vmem:[%s515_s1 + $0x108] sm:$0xff]  ;;  %v221_v56 = vld [vmem:[%s515_s1 + $0xb8] sm:$0xff]  ;;  %v236_v58 = vld [vmem:[%s515_s1 + $0xf0] sm:$0xff] }
  0x18   :  { %v143_v46 = vmax.f32 %v125_v37, %v234_v33  ;;  %v126_v50 = vmax.f32 %v108_v43, %v227_v38  ;;  %v74_v52 = vmax.f32 %v56_v45, %v205_v40  ;;  %v229_v61 = vld [vmem:[%s515_s1 + $0xd8] sm:$0xff]  ;;  %v244_v63 = vld [vmem:[%s515_s1 + $0x110] sm:$0xff] }
  0x19   :  { %v109_v55 = vmax.f32 %v91_v48, %v220_v44  ;;  %v237_v2 = vld [vmem:[%s515_s1 + $0xf8] sm:$0xff] }
  0x1a   :  { %v161_v53 = vmax.f32 %v143_v46, %v242_v42  ;;  %v144_v57 = vmax.f32 %v126_v50, %v235_v47  ;;  %v92_v59 = vmax.f32 %v74_v52, %v213_v49  ;;  %v245_v5 = vld [vmem:[%s515_s1 + $0x118] sm:$0xff] }
  0x1b   :  { %v127_v60 = vmax.f32 %v109_v55, %v228_v51 }
  0x1c   :  { %170 = vst.msk [vmem:[%s517_s3] sm:$0xff] %vm165_vm0, %v161_v53  ;;  %v162_v62 = vmax.f32 %v144_v57, %v243_v54  ;;  %v110_v0 = vmax.f32 %v92_v59, %v221_v56 }
  0x1d   :  { %v145_v1 = vmax.f32 %v127_v60, %v236_v58 }
  0x1e   :  { %171 = vst.msk [vmem:[%s517_s3 + $0x8] sm:$0xff] %vm165_vm0, %v162_v62  ;;  %v128_v3 = vmax.f32 %v110_v0, %v229_v61 }
  0x1f   :  { %v163_v4 = vmax.f32 %v145_v1, %v244_v63 }
  0x20   :  { %v146_v6 = vmax.f32 %v128_v3, %v237_v2 }
  0x21   :  { %172 = vst.msk [vmem:[%s517_s3 + $0x10] sm:$0xff] %vm165_vm0, %v163_v4 }
  0x22   :  { %v164_v7 = vmax.f32 %v146_v6, %v245_v5 }
  0x24   :  { %173 = vst.msk [vmem:[%s517_s3 + $0x18] sm:$0xff] %vm165_vm0, %v164_v7 }

// kernel: rdcl_forward.4
= control target key start
LH: loop header
LB: loop body
LE: loop exit
PB: predicated region body
PF: predicated region fallthrough
CT: control target
= control target key end

     0   :  { %vm361_vm0 = vcmask 195584   ;;  %s857_s1 = inlined_call_operand.vmem [shape: bf16[256,24], index: 1, kind: input, shape index: {}]   ;;  %s858_s0 = inlined_call_operand.vmem [shape: bf16[128,256], index: 0, kind: input, shape index: {}]   ;;  %s859_s2 = inlined_call_operand.vmem [shape: f32[1,24], index: 2, kind: input, shape index: {}]   ;;  %s860_s3 = inlined_call_operand.vmem [shape: f32[128,24], index: 3, kind: output, shape index: {0}]   ;;  %s861_s4 = inlined_call_operand.vmem [shape: f32[128,24], index: 4, kind: output, shape index: {1}]  }
   0x1   :  { %v547_v0 = vld [vmem:[%s857_s1 + $0x78] sm:$0xff]   ;;  %v549_v2 = vld [vmem:[%s857_s1 + $0x70] sm:$0xff]   ;;  %v551_v4 = vld [vmem:[%s857_s1 + $0x68] sm:$0xff]  }
   0x2   :  { %v548_v1 = vld [vmem:[%s857_s1 + $0x38] sm:$0xff]   ;;  %467 = vmatprep.subr.bf16.mxu0 %v547_v0  ;;  %531 = vmatprep.subr.bf16.mxu1 %v547_v0  ;;  %v550_v3 = vld [vmem:[%s857_s1 + $0x30] sm:$0xff]   ;;  %v552_v5 = vld [vmem:[%s857_s1 + $0x28] sm:$0xff]  }
   0x3   :  { %468 = vmatpush3.bf16.msra.mxu0 %v548_v1  ;;  %539 = vmatpush3.bf16.msra.mxu1 %v548_v1  ;;  %v553_v6 = vld [vmem:[%s857_s1 + $0x60] sm:$0xff]   ;;  %v555_v8 = vld [vmem:[%s857_s1 + $0x58] sm:$0xff]   ;;  %v557_v10 = vld [vmem:[%s857_s1 + $0x50] sm:$0xff]  }
   0x4   :  { %469 = vmatprep.subr.bf16.mxu0 %v549_v2  ;;  %532 = vmatprep.subr.bf16.mxu1 %v549_v2  ;;  %v554_v7 = vld [vmem:[%s857_s1 + $0x20] sm:$0xff]   ;;  %v556_v9 = vld [vmem:[%s857_s1 + $0x18] sm:$0xff]   ;;  %v558_v13 = vld [vmem:[%s857_s1 + $0x10] sm:$0xff]  }
   0x5   :  { %v565_v11 = vld [vmem:[%s858_s0 + $0x4] ss:$8 sps:$4 sm:$0xff]   ;;  %v563_v18 = vld [vmem:[%s858_s0] ss:$8 sps:$4 sm:$0xff]   ;;  %v569_v20 = vld [vmem:[%s858_s0 + $0x14] ss:$8 sps:$4 sm:$0xff]  }
   0x6   :  { %v568_v12 = vld [vmem:[%s858_s0 + $0x44] ss:$8 sps:$4 sm:$0xff]   ;;  %280 = vmatprep.mubr.bf16.mxu0 %v565_v11  ;;  %v566_v19 = vld [vmem:[%s858_s0 + $0x40] ss:$8 sps:$4 sm:$0xff]   ;;  %v571_v21 = vld [vmem:[%s858_s0 + $0x54] ss:$8 sps:$4 sm:$0xff]  }
   0x7   :  { %470 = vmatpush3.bf16.msra.mxu0 %v550_v3  ;;  %540 = vmatpush3.bf16.msra.mxu1 %v550_v3  ;;  %v559_v14 = vld [vmem:[%s857_s1 + $0x48] sm:$0xff]   ;;  %v561_v16 = vld [vmem:[%s857_s1 + $0x40] sm:$0xff]   ;;  %v573_v22 = vld [vmem:[%s858_s0 + $0x10] ss:$8 sps:$4 sm:$0xff]  }
   0x8   :  { %471 = vmatprep.subr.bf16.mxu0 %v551_v4  ;;  %533 = vmatprep.subr.bf16.mxu1 %v551_v4  ;;  %v560_v15 = vld [vmem:[%s857_s1 + $0x8] sm:$0xff]   ;;  %v562_v17 = vld [vmem:[%s857_s1] sm:$0xff]   ;;  %v574_v23 = vld [vmem:[%s858_s0 + $0x50] ss:$8 sps:$4 sm:$0xff]  }
   0x9   :  { %312 = vmatprep.mubr.bf16.mxu1 %v568_v12  ;;  %v575_v24 = vld [vmem:[%s858_s0 + $0x24] ss:$8 sps:$4 sm:$0xff]   ;;  %v579_v26 = vld [vmem:[%s858_s0 + $0x20] ss:$8 sps:$4 sm:$0xff]   ;;  %v581_v28 = vld [vmem:[%s858_s0 + $0x34] ss:$8 sps:$4 sm:$0xff]  }
   0xa   :  { %v577_v25 = vld [vmem:[%s858_s0 + $0x64] ss:$8 sps:$4 sm:$0xff]   ;;  %v580_v27 = vld [vmem:[%s858_s0 + $0x60] ss:$8 sps:$4 sm:$0xff]   ;;  %v583_v29 = vld [vmem:[%s858_s0 + $0x74] ss:$8 sps:$4 sm:$0xff]  }
   0xb   :  { %472 = vmatpush3.bf16.msra.mxu0 %v552_v5  ;;  %541 = vmatpush3.bf16.msra.mxu1 %v552_v5  ;;  %v585_v30 = vld [vmem:[%s858_s0 + $0x30] ss:$8 sps:$4 sm:$0xff]   ;;  %v711_v34 = vld [vmem:[%s859_s2] ss:$0 sm:$0xff] }
   0xc   :  { %473 = vmatprep.subr.bf16.mxu0 %v553_v6  ;;  %534 = vmatprep.subr.bf16.mxu1 %v553_v6  ;;  %v586_v31 = vld [vmem:[%s858_s0 + $0x70] ss:$8 sps:$4 sm:$0xff]  }
   0xf   :  { %474 = vmatpush3.bf16.msra.mxu0 %v554_v7  ;;  %542 = vmatpush3.bf16.msra.mxu1 %v554_v7 }
  0x10   :  { %475 = vmatprep.subr.bf16.mxu0 %v555_v8  ;;  %535 = vmatprep.subr.bf16.mxu1 %v555_v8 }
  0x13   :  { %476 = vmatpush3.bf16.msra.mxu0 %v556_v9  ;;  %543 = vmatpush3.bf16.msra.mxu1 %v556_v9 }
  0x14   :  { %477 = vmatprep.subr.bf16.mxu0 %v557_v10  ;;  %536 = vmatprep.subr.bf16.mxu1 %v557_v10 }
  0x17   :  { %478 = vmatpush3.bf16.msra.mxu0 %v558_v13  ;;  %544 = vmatpush3.bf16.msra.mxu1 %v558_v13 }
  0x18   :  { %479 = vmatprep.subr.bf16.mxu0 %v559_v14  ;;  %537 = vmatprep.subr.bf16.mxu1 %v559_v14 }
  0x1b   :  { %480 = vmatpush3.bf16.msra.mxu0 %v560_v15  ;;  %545 = vmatpush3.bf16.msra.mxu1 %v560_v15 }
  0x1c   :  { %481 = vmatprep.subr.bf16.mxu0 %v561_v16  ;;  %538 = vmatprep.subr.bf16.mxu1 %v561_v16 }
  0x1f   :  { %482 = vmatpush3.bf16.msra.mxu0 %v562_v17  ;;  %546 = vmatpush3.bf16.msra.mxu1 %v562_v17 }
  0x22   :  { %281 = vmatmul.mubr.bf16.vlgmr.msra.gmra.mxu0 %v563_v18  ;;  %313 = vmatmul.mubr.bf16.vlgmr.msra.gmra.mxu1 %v566_v19 }
  0x23   :  { %288 = vmatprep.mubr.bf16.mxu0 %v569_v20  ;;  %320 = vmatprep.mubr.bf16.mxu1 %v571_v21 }
  0x2a   :  { %289 = vmatmul.mubr.bf16.gmra.mxu0 %v573_v22  ;;  %321 = vmatmul.mubr.bf16.gmra.mxu1 %v574_v23 }
  0x2b   :  { %296 = vmatprep.mubr.bf16.mxu0 %v575_v24  ;;  %328 = vmatprep.mubr.bf16.mxu1 %v577_v25 }
  0x32   :  { %297 = vmatmul.mubr.bf16.gmra.mxu0 %v579_v26  ;;  %329 = vmatmul.mubr.bf16.gmra.mxu1 %v580_v27 }
  0x33   :  { %304 = vmatprep.mubr.bf16.mxu0 %v581_v28  ;;  %336 = vmatprep.mubr.bf16.mxu1 %v583_v29 }
  0x3a   :  { %305 = vmatmul.mubr.bf16.gmra.mxu0 %v585_v30  ;;  %337 = vmatmul.mubr.bf16.gmra.mxu1 %v586_v31 }
  0xe2   :  { %v483_v32 = vpop.f32.mrf.mxu0  ;;  %v507_v33 = vpop.f32.mrf.mxu1 }
  0xe4   :  { %v484_v35 = vpop.f32.mrf.mxu0  ;;  %v508_v36 = vpop.f32.mrf.mxu1 }
  0xe5   :  { %v485_v37 = vadd.f32 %v484_v35, %v483_v32  ;;  %v509_v38 = vadd.f32 %v508_v36, %v507_v33 }
  0xe6   :  { %v486_v39 = vpop.f32.mrf.mxu0  ;;  %v510_v40 = vpop.f32.mrf.mxu1 }
  0xe7   :  { %v283_v41 = vadd.f32 %v485_v37, %v711_v34  ;;  %v315_v42 = vadd.f32 %v509_v38, %v711_v34 }
  0xe8   :  { %v487_v43 = vpop.f32.mrf.mxu0  ;;  %v511_v44 = vpop.f32.mrf.mxu1 }
  0xe9   :  { %v345_v45 = vmax.f32 %v283_v41, 0.0  ;;  %v378_v46 = vsub.f32 0.0, %v283_v41  ;;  %v353_v47 = vmax.f32 %v315_v42, 0.0  ;;  %v386_v48 = vsub.f32 0.0, %v315_v42 }
  0xea   :  { %v488_v49 = vadd.f32 %v487_v43, %v486_v39  ;;  %v512_v50 = vadd.f32 %v511_v44, %v510_v40  ;;  %v489_v51 = vpop.f32.mrf.mxu0  ;;  %v513_v52 = vpop.f32.mrf.mxu1 }
  0xeb   :  { %362 = vst.msk [vmem:[%s860_s3] sm:$0xff] %vm361_vm0, %v345_v45  ;;  %v394_v53 = vmax.f32 %v378_v46, 0.0  ;;  %370 = vst.msk [vmem:[%s860_s3 + $0x40] sm:$0xff] %vm361_vm0, %v353_v47  ;;  %v402_v54 = vmax.f32 %v386_v48, 0.0 }
  0xec   :  { %v286_v55 = vadd.f32 %v488_v49, %v711_v34  ;;  %v318_v56 = vadd.f32 %v512_v50, %v711_v34  ;;  %v490_v57 = vpop.f32.mrf.mxu0  ;;  %v514_v58 = vpop.f32.mrf.mxu1 }
  0xed   :  { %410 = vst.msk [vmem:[%s861_s4] sm:$0xff] %vm361_vm0, %v394_v53  ;;  %418 = vst.msk [vmem:[%s861_s4 + $0x40] sm:$0xff] %vm361_vm0, %v402_v54  ;;  %v491_v59 = vadd.f32 %v490_v57, %v489_v51  ;;  %v515_v60 = vadd.f32 %v514_v58, %v513_v52 }
  0xee   :  { %v346_v61 = vmax.f32 %v286_v55, 0.0  ;;  %v379_v62 = vsub.f32 0.0, %v286_v55  ;;  %v354_v63 = vmax.f32 %v318_v56, 0.0  ;;  %v387_v0 = vsub.f32 0.0, %v318_v56  ;;  %v492_v1 = vpop.f32.mrf.mxu0  ;;  %v516_v2 = vpop.f32.mrf.mxu1 }
  0xef   :  { %v291_v3 = vadd.f32 %v491_v59, %v711_v34  ;;  %v323_v4 = vadd.f32 %v515_v60, %v711_v34 }
  0xf0   :  { %363 = vst.msk [vmem:[%s860_s3 + $0x8] sm:$0xff] %vm361_vm0, %v346_v61  ;;  %v395_v5 = vmax.f32 %v379_v62, 0.0  ;;  %371 = vst.msk [vmem:[%s860_s3 + $0x48] sm:$0xff] %vm361_vm0, %v354_v63  ;;  %v403_v6 = vmax.f32 %v387_v0, 0.0  ;;  %v493_v7 = vpop.f32.mrf.mxu0  ;;  %v517_v8 = vpop.f32.mrf.mxu1 }
  0xf1   :  { %v347_v9 = vmax.f32 %v291_v3, 0.0  ;;  %v380_v10 = vsub.f32 0.0, %v291_v3  ;;  %v355_v11 = vmax.f32 %v323_v4, 0.0  ;;  %v388_v12 = vsub.f32 0.0, %v323_v4 }
  0xf2   :  { %411 = vst.msk [vmem:[%s861_s4 + $0x8] sm:$0xff] %vm361_vm0, %v395_v5  ;;  %419 = vst.msk [vmem:[%s861_s4 + $0x48] sm:$0xff] %vm361_vm0, %v403_v6  ;;  %v494_v13 = vadd.f32 %v493_v7, %v492_v1  ;;  %v518_v14 = vadd.f32 %v517_v8, %v516_v2  ;;  %v495_v15 = vpop.f32.mrf.mxu0  ;;  %v519_v16 = vpop.f32.mrf.mxu1 }
  0xf3   :  { %364 = vst.msk [vmem:[%s860_s3 + $0x10] sm:$0xff] %vm361_vm0, %v347_v9  ;;  %v396_v17 = vmax.f32 %v380_v10, 0.0  ;;  %372 = vst.msk [vmem:[%s860_s3 + $0x50] sm:$0xff] %vm361_vm0, %v355_v11  ;;  %v404_v18 = vmax.f32 %v388_v12, 0.0 }
  0xf4   :  { %v294_v19 = vadd.f32 %v494_v13, %v711_v34  ;;  %v326_v20 = vadd.f32 %v518_v14, %v711_v34  ;;  %v496_v21 = vpop.f32.mrf.mxu0  ;;  %v520_v22 = vpop.f32.mrf.mxu1 }
  0xf5   :  { %412 = vst.msk [vmem:[%s861_s4 + $0x10] sm:$0xff] %vm361_vm0, %v396_v17  ;;  %420 = vst.msk [vmem:[%s861_s4 + $0x50] sm:$0xff] %vm361_vm0, %v404_v18  ;;  %v497_v23 = vadd.f32 %v496_v21, %v495_v15  ;;  %v521_v24 = vadd.f32 %v520_v22, %v519_v16 }
  0xf6   :  { %v348_v25 = vmax.f32 %v294_v19, 0.0  ;;  %v381_v26 = vsub.f32 0.0, %v294_v19  ;;  %v356_v27 = vmax.f32 %v326_v20, 0.0  ;;  %v389_v28 = vsub.f32 0.0, %v326_v20  ;;  %v498_v29 = vpop.f32.mrf.mxu0  ;;  %v522_v30 = vpop.f32.mrf.mxu1 }
  0xf7   :  { %v299_v31 = vadd.f32 %v497_v23, %v711_v34  ;;  %v331_v32 = vadd.f32 %v521_v24, %v711_v34 }
  0xf8   :  { %365 = vst.msk [vmem:[%s860_s3 + $0x18] sm:$0xff] %vm361_vm0, %v348_v25  ;;  %v397_v33 = vmax.f32 %v381_v26, 0.0  ;;  %373 = vst.msk [vmem:[%s860_s3 + $0x58] sm:$0xff] %vm361_vm0, %v356_v27  ;;  %v405_v35 = vmax.f32 %v389_v28, 0.0  ;;  %v499_v36 = vpop.f32.mrf.mxu0  ;;  %v523_v37 = vpop.f32.mrf.mxu1 }
  0xf9   :  { %v349_v38 = vmax.f32 %v299_v31, 0.0  ;;  %v382_v39 = vsub.f32 0.0, %v299_v31  ;;  %v357_v40 = vmax.f32 %v331_v32, 0.0  ;;  %v390_v41 = vsub.f32 0.0, %v331_v32 }
  0xfa   :  { %413 = vst.msk [vmem:[%s861_s4 + $0x18] sm:$0xff] %vm361_vm0, %v397_v33  ;;  %421 = vst.msk [vmem:[%s861_s4 + $0x58] sm:$0xff] %vm361_vm0, %v405_v35  ;;  %v500_v42 = vadd.f32 %v499_v36, %v498_v29  ;;  %v524_v43 = vadd.f32 %v523_v37, %v522_v30  ;;  %v501_v44 = vpop.f32.mrf.mxu0  ;;  %v525_v45 = vpop.f32.mrf.mxu1 }
  0xfb   :  { %366 = vst.msk [vmem:[%s860_s3 + $0x20] sm:$0xff] %vm361_vm0, %v349_v38  ;;  %v398_v46 = vmax.f32 %v382_v39, 0.0  ;;  %374 = vst.msk [vmem:[%s860_s3 + $0x60] sm:$0xff] %vm361_vm0, %v357_v40  ;;  %v406_v47 = vmax.f32 %v390_v41, 0.0 }
  0xfc   :  { %v302_v48 = vadd.f32 %v500_v42, %v711_v34  ;;  %v334_v49 = vadd.f32 %v524_v43, %v711_v34  ;;  %v502_v50 = vpop.f32.mrf.mxu0  ;;  %v526_v51 = vpop.f32.mrf.mxu1 }
  0xfd   :  { %414 = vst.msk [vmem:[%s861_s4 + $0x20] sm:$0xff] %vm361_vm0, %v398_v46  ;;  %422 = vst.msk [vmem:[%s861_s4 + $0x60] sm:$0xff] %vm361_vm0, %v406_v47  ;;  %v503_v52 = vadd.f32 %v502_v50, %v501_v44  ;;  %v527_v53 = vadd.f32 %v526_v51, %v525_v45 }
  0xfe   :  { %v350_v54 = vmax.f32 %v302_v48, 0.0  ;;  %v383_v55 = vsub.f32 0.0, %v302_v48  ;;  %v358_v56 = vmax.f32 %v334_v49, 0.0  ;;  %v391_v57 = vsub.f32 0.0, %v334_v49  ;;  %v504_v58 = vpop.f32.mrf.mxu0  ;;  %v528_v59 = vpop.f32.mrf.mxu1 }
  0xff   :  { %v307_v60 = vadd.f32 %v503_v52, %v711_v34  ;;  %v339_v61 = vadd.f32 %v527_v53, %v711_v34 }
 0x100   :  { %367 = vst.msk [vmem:[%s860_s3 + $0x28] sm:$0xff] %vm361_vm0, %v350_v54  ;;  %v399_v62 = vmax.f32 %v383_v55, 0.0  ;;  %375 = vst.msk [vmem:[%s860_s3 + $0x68] sm:$0xff] %vm361_vm0, %v358_v56  ;;  %v407_v63 = vmax.f32 %v391_v57, 0.0  ;;  %v505_v0 = vpop.f32.mrf.mxu0  ;;  %v529_v1 = vpop.f32.mrf.mxu1 }
 0x101   :  { %v351_v2 = vmax.f32 %v307_v60, 0.0  ;;  %v384_v3 = vsub.f32 0.0, %v307_v60  ;;  %v359_v4 = vmax.f32 %v339_v61, 0.0  ;;  %v392_v5 = vsub.f32 0.0, %v339_v61 }
 0x102   :  { %415 = vst.msk [vmem:[%s861_s4 + $0x28] sm:$0xff] %vm361_vm0, %v399_v62  ;;  %423 = vst.msk [vmem:[%s861_s4 + $0x68] sm:$0xff] %vm361_vm0, %v407_v63  ;;  %v506_v6 = vadd.f32 %v505_v0, %v504_v58  ;;  %v530_v7 = vadd.f32 %v529_v1, %v528_v59 }
 0x103   :  { %368 = vst.msk [vmem:[%s860_s3 + $0x30] sm:$0xff] %vm361_vm0, %v351_v2  ;;  %v400_v8 = vmax.f32 %v384_v3, 0.0  ;;  %376 = vst.msk [vmem:[%s860_s3 + $0x70] sm:$0xff] %vm361_vm0, %v359_v4  ;;  %v408_v9 = vmax.f32 %v392_v5, 0.0 }
 0x104   :  { %v310_v10 = vadd.f32 %v506_v6, %v711_v34  ;;  %v342_v11 = vadd.f32 %v530_v7, %v711_v34 }
 0x105   :  { %416 = vst.msk [vmem:[%s861_s4 + $0x30] sm:$0xff] %vm361_vm0, %v400_v8  ;;  %424 = vst.msk [vmem:[%s861_s4 + $0x70] sm:$0xff] %vm361_vm0, %v408_v9 }
 0x106   :  { %v352_v12 = vmax.f32 %v310_v10, 0.0  ;;  %v385_v13 = vsub.f32 0.0, %v310_v10  ;;  %v360_v14 = vmax.f32 %v342_v11, 0.0  ;;  %v393_v15 = vsub.f32 0.0, %v342_v11 }
 0x108   :  { %369 = vst.msk [vmem:[%s860_s3 + $0x38] sm:$0xff] %vm361_vm0, %v352_v12  ;;  %v401_v34 = vmax.f32 %v385_v13, 0.0  ;;  %377 = vst.msk [vmem:[%s860_s3 + $0x78] sm:$0xff] %vm361_vm0, %v360_v14  ;;  %v409_v16 = vmax.f32 %v393_v15, 0.0 }
 0x10a   :  { %417 = vst.msk [vmem:[%s861_s4 + $0x38] sm:$0xff] %vm361_vm0, %v401_v34  ;;  %425 = vst.msk [vmem:[%s861_s4 + $0x78] sm:$0xff] %vm361_vm0, %v409_v16 }

// kernel: rdcl_forward.7
= control target key start
LH: loop header
LB: loop body
LE: loop exit
PB: predicated region body
PF: predicated region fallthrough
CT: control target
= control target key end

     0   :  { %vm63_vm0 = vcmask 523264   ;;  %s170_s0 = inlined_call_operand.vmem [shape: f32[9,8,64], index: 0, kind: input, shape index: {}]   ;;  %s171_s1 = inlined_call_operand.vmem [shape: f32[9,8,64], index: 1, kind: input, shape index: {}]   ;;  %s172_s2 = inlined_call_operand.vmem [shape: f32[8,64], index: 2, kind: output, shape index: {0}]   ;;  %s173_s3 = inlined_call_operand.vmem [shape: f32[8,64], index: 3, kind: output, shape index: {1}]  }
   0x1   :  { %v13_v0 = vld [vmem:[%s170_s0] sm:$0xff]  ;;  %v74_v1 = vld [vmem:[%s170_s0 + $0x8] sm:$0xff]  ;;  %v76_v2 = vld [vmem:[%s170_s0 + $0x10] sm:$0xff] }
   0x2   :  { %v17_v3 = vmax.f32 %v13_v0, %v74_v1  ;;  %v78_v4 = vld [vmem:[%s170_s0 + $0x18] sm:$0xff]  ;;  %v14_v6 = vld [vmem:[%s171_s1] sm:$0xff]  ;;  %v75_v7 = vld [vmem:[%s171_s1 + $0x8] sm:$0xff] }
   0x3   :  { %v77_v8 = vld [vmem:[%s171_s1 + $0x10] sm:$0xff]  ;;  %v80_v9 = vld [vmem:[%s170_s0 + $0x20] sm:$0xff]  ;;  %v20_v10 = vmax.f32 %v14_v6, %v75_v7  ;;  %v79_v12 = vld [vmem:[%s171_s1 + $0x18] sm:$0xff] }
   0x4   :  { %v23_v5 = vmax.f32 %v17_v3, %v76_v2  ;;  %v82_v13 = vld [vmem:[%s170_s0 + $0x28] sm:$0xff]  ;;  %v81_v16 = vld [vmem:[%s171_s1 + $0x20] sm:$0xff]  ;;  %v84_v17 = vld [vmem:[%s170_s0 + $0x30] sm:$0xff] }
   0x5   :  { %v26_v14 = vmax.f32 %v20_v10, %v77_v8  ;;  %v83_v20 = vld [vmem:[%s171_s1 + $0x28] sm:$0xff]  ;;  %v86_v21 = vld [vmem:[%s170_s0 + $0x38] sm:$0xff]  ;;  %v85_v24 = vld [vmem:[%s171_s1 + $0x30] sm:$0xff] }
   0x6   :  { %v29_v11 = vmax.f32 %v23_v5, %v78_v4  ;;  %v88_v25 = vld [vmem:[%s170_s0 + $0x40] sm:$0xff]  ;;  %v87_v28 = vld [vmem:[%s171_s1 + $0x38] sm:$0xff] }
   0x7   :  { %v32_v18 = vmax.f32 %v26_v14, %v79_v12  ;;  %v89_v31 = vld [vmem:[%s171_s1 + $0x40] sm:$0xff] }
   0x8   :  { %v35_v15 = vmax.f32 %v29_v11, %v80_v9 }
   0x9   :  { %v38_v22 = vmax.f32 %v32_v18, %v81_v16 }
   0xa   :  { %v41_v19 = vmax.f32 %v35_v15, %v82_v13 }
   0xb   :  { %v44_v26 = vmax.f32 %v38_v22, %v83_v20 }
   0xc   :  { %v47_v23 = vmax.f32 %v41_v19, %v84_v17 }
   0xd   :  { %v50_v29 = vmax.f32 %v44_v26, %v85_v24 }
   0xe   :  { %v53_v27 = vmax.f32 %v47_v23, %v86_v21 }
   0xf   :  { %v56_v32 = vmax.f32 %v50_v29, %v87_v28 }
  0x10   :  { %v59_v30 = vmax.f32 %v53_v27, %v88_v25 }
  0x11   :  { %v62_v33 = vmax.f32 %v56_v32, %v89_v31 }
  0x12   :  { %64 = vst.msk [vmem:[%s172_s2] sm:$0xff] %vm63_vm0, %v59_v30 }
  0x13   :  { %65 = vst.msk [vmem:[%s173_s3] sm:$0xff] %vm63_vm0, %v62_v33 }

// kernel: rdcl_forward.6
= control target key start
LH: loop header
LB: loop body
LE: loop exit
PB: predicated region body
PF: predicated region fallthrough
CT: control target
= control target key end

     0   :  { %vm905_vm0 = vcmask 523264   ;;  %s1498_s1 = inlined_call_operand.vmem [shape: bf16[1280,64], index: 1, kind: input, shape index: {}]   ;;  %s1499_s0 = inlined_call_operand.vmem [shape: bf16[8,1280], index: 0, kind: input, shape index: {}]   ;;  %s1500_s2 = inlined_call_operand.vmem [shape: f32[1,64], index: 2, kind: input, shape index: {}]   ;;  %s1501_s3 = inlined_call_operand.vmem [shape: f32[8,64], index: 3, kind: output, shape index: {0}]   ;;  %s1502_s4 = inlined_call_operand.vmem [shape: f32[8,64], index: 4, kind: output, shape index: {1}]  }
   0x1   :  { %v1119_v0 = vld [vmem:[%s1498_s1 + $0x78] sm:$0xff]   ;;  %v1123_v4 = vld [vmem:[%s1498_s1 + $0x70] sm:$0xff]   ;;  %v1127_v8 = vld [vmem:[%s1498_s1 + $0x68] sm:$0xff]  }
   0x2   :  { %v1120_v1 = vld [vmem:[%s1498_s1 + $0x38] sm:$0xff]   ;;  %1009 = vmatprep.subr.bf16.mxu0 %v1119_v0  ;;  %v1124_v5 = vld [vmem:[%s1498_s1 + $0x30] sm:$0xff]   ;;  %v1128_v9 = vld [vmem:[%s1498_s1 + $0x28] sm:$0xff]  }
   0x3   :  { %v1121_v2 = vld [vmem:[%s1498_s1 + $0xf8] sm:$0xff]   ;;  %1010 = vmatpush3.bf16.msra.mxu0 %v1120_v1  ;;  %v1125_v6 = vld [vmem:[%s1498_s1 + $0xf0] sm:$0xff]   ;;  %v1129_v10 = vld [vmem:[%s1498_s1 + $0xe8] sm:$0xff]  }
   0x4   :  { %v1122_v3 = vld [vmem:[%s1498_s1 + $0xb8] sm:$0xff]   ;;  %1031 = vmatprep.subr.bf16.mxu1 %v1121_v2  ;;  %1011 = vmatprep.subr.bf16.mxu0 %v1123_v4  ;;  %v1126_v7 = vld [vmem:[%s1498_s1 + $0xb0] sm:$0xff]   ;;  %v1130_v11 = vld [vmem:[%s1498_s1 + $0xa8] sm:$0xff]  }
   0x5   :  { %1032 = vmatpush3.bf16.msra.mxu1 %v1122_v3  ;;  %v1131_v12 = vld [vmem:[%s1498_s1 + $0x60] sm:$0xff]   ;;  %v1135_v16 = vld [vmem:[%s1498_s1 + $0x58] sm:$0xff]   ;;  %v1139_v20 = vld [vmem:[%s1498_s1 + $0x50] sm:$0xff]  }
   0x6   :  { %1033 = vmatprep.subr.bf16.mxu1 %v1125_v6  ;;  %v1132_v13 = vld [vmem:[%s1498_s1 + $0x20] sm:$0xff]   ;;  %v1136_v17 = vld [vmem:[%s1498_s1 + $0x18] sm:$0xff]   ;;  %v1140_v21 = vld [vmem:[%s1498_s1 + $0x10] sm:$0xff]  }
   0x7   :  { %1012 = vmatpush3.bf16.msra.mxu0 %v1124_v5  ;;  %v1133_v14 = vld [vmem:[%s1498_s1 + $0xe0] sm:$0xff]   ;;  %v1137_v18 = vld [vmem:[%s1498_s1 + $0xd8] sm:$0xff]   ;;  %v1141_v22 = vld [vmem:[%s1498_s1 + $0xd0] sm:$0xff]  }
   0x8   :  { %1013 = vmatprep.subr.bf16.mxu0 %v1127_v8  ;;  %v1134_v15 = vld [vmem:[%s1498_s1 + $0xa0] sm:$0xff]   ;;  %v1138_v19 = vld [vmem:[%s1498_s1 + $0x98] sm:$0xff]   ;;  %v1142_v23 = vld [vmem:[%s1498_s1 + $0x90] sm:$0xff]  }
   0x9   :  { %1034 = vmatpush3.bf16.msra.mxu1 %v1126_v7  ;;  %v1143_v24 = vld [vmem:[%s1498_s1 + $0x48] sm:$0xff]   ;;  %v1147_v28 = vld [vmem:[%s1498_s1 + $0x40] sm:$0xff]   ;;  %v1153_v35 = vld [vmem:[%s1498_s1 + $0x178] sm:$0xff]  }
   0xa   :  { %1035 = vmatprep.subr.bf16.mxu1 %v1129_v10  ;;  %v1144_v25 = vld [vmem:[%s1498_s1 + $0x8] sm:$0xff]   ;;  %v1148_v29 = vld [vmem:[%s1498_s1] sm:$0xff]   ;;  %v1156_v39 = vld [vmem:[%s1498_s1 + $0x138] sm:$0xff]  }
   0xb   :  { %1014 = vmatpush3.bf16.msra.mxu0 %v1128_v9  ;;  %v1145_v26 = vld [vmem:[%s1498_s1 + $0xc8] sm:$0xff]   ;;  %v1149_v30 = vld [vmem:[%s1498_s1 + $0xc0] sm:$0xff]   ;;  %v1157_v40 = vld [vmem:[%s1498_s1 + $0x1f8] sm:$0xff]  }
   0xc   :  { %1015 = vmatprep.subr.bf16.mxu0 %v1131_v12  ;;  %v1146_v27 = vld [vmem:[%s1498_s1 + $0x88] sm:$0xff]   ;;  %v17_v31 = vld [vmem:[%s1499_s0] sm:$0xff]  ;;  %v1158_v41 = vld [vmem:[%s1498_s1 + $0x1b8] sm:$0xff]  }
   0xd   :  { %1036 = vmatpush3.bf16.msra.mxu1 %v1130_v11  ;;  %v919_v32 = vcombine.low %v17_v31, %v17_v31  ;;  %v920_v33 = vcombine.high %v17_v31, %v17_v31  ;;  %v1152_v34 = vld [vmem:[%s1498_s1 + $0x80] sm:$0xff]   ;;  %v18_v36 = vld [vmem:[%s1499_s0 + $0x8] sm:$0xff]  ;;  %v1159_v42 = vld [vmem:[%s1498_s1 + $0x170] sm:$0xff]  }
   0xe   :  { %1037 = vmatprep.subr.bf16.mxu1 %v1133_v14  ;;  %v921_v37 = vcombine.low %v18_v36, %v18_v36  ;;  %v922_v38 = vcombine.high %v18_v36, %v18_v36  ;;  %v1160_v43 = vld [vmem:[%s1498_s1 + $0x130] sm:$0xff]   ;;  %v1163_v46 = vld [vmem:[%s1498_s1 + $0x168] sm:$0xff]   ;;  %v1167_v50 = vld [vmem:[%s1498_s1 + $0x160] sm:$0xff]  }
   0xf   :  { %1016 = vmatpush3.bf16.msra.mxu0 %v1132_v13  ;;  %736 = vmatprep.mubr.bf16.mxu0 %v920_v33  ;;  %v1161_v44 = vld [vmem:[%s1498_s1 + $0x1f0] sm:$0xff]   ;;  %v1164_v47 = vld [vmem:[%s1498_s1 + $0x128] sm:$0xff]   ;;  %v1168_v51 = vld [vmem:[%s1498_s1 + $0x120] sm:$0xff]  }
  0x10   :  { %1017 = vmatprep.subr.bf16.mxu0 %v1135_v16  ;;  %776 = vmatprep.mubr.bf16.mxu1 %v922_v38  ;;  %v1162_v45 = vld [vmem:[%s1498_s1 + $0x1b0] sm:$0xff]   ;;  %v1165_v48 = vld [vmem:[%s1498_s1 + $0x1e8] sm:$0xff]   ;;  %v1169_v52 = vld [vmem:[%s1498_s1 + $0x1e0] sm:$0xff]  }
  0x11   :  { %1038 = vmatpush3.bf16.msra.mxu1 %v1134_v15  ;;  %v1166_v49 = vld [vmem:[%s1498_s1 + $0x1a8] sm:$0xff]   ;;  %v1170_v53 = vld [vmem:[%s1498_s1 + $0x1a0] sm:$0xff]   ;;  %v1171_v54 = vld [vmem:[%s1498_s1 + $0x158] sm:$0xff]  }
  0x12   :  { %1039 = vmatprep.subr.bf16.mxu1 %v1137_v18  ;;  %v1172_v55 = vld [vmem:[%s1498_s1 + $0x118] sm:$0xff]   ;;  %v1175_v58 = vld [vmem:[%s1498_s1 + $0x150] sm:$0xff]   ;;  %v1179_v62 = vld [vmem:[%s1498_s1 + $0x148] sm:$0xff]  }
  0x13   :  { %1018 = vmatpush3.bf16.msra.mxu0 %v1136_v17  ;;  %v1173_v56 = vld [vmem:[%s1498_s1 + $0x1d8] sm:$0xff]   ;;  %v1176_v59 = vld [vmem:[%s1498_s1 + $0x110] sm:$0xff]   ;;  %v1180_v63 = vld [vmem:[%s1498_s1 + $0x108] sm:$0xff]  }
  0x14   :  { %1019 = vmatprep.subr.bf16.mxu0 %v1139_v20  ;;  %v1174_v57 = vld [vmem:[%s1498_s1 + $0x198] sm:$0xff]   ;;  %v1177_v60 = vld [vmem:[%s1498_s1 + $0x1d0] sm:$0xff]   ;;  %v1181_v0 = vld [vmem:[%s1498_s1 + $0x1c8] sm:$0xff]  }
  0x15   :  { %1040 = vmatpush3.bf16.msra.mxu1 %v1138_v19  ;;  %v1178_v61 = vld [vmem:[%s1498_s1 + $0x190] sm:$0xff]   ;;  %v1182_v1 = vld [vmem:[%s1498_s1 + $0x188] sm:$0xff]   ;;  %v1183_v2 = vld [vmem:[%s1498_s1 + $0x140] sm:$0xff]  }
  0x16   :  { %1041 = vmatprep.subr.bf16.mxu1 %v1141_v22  ;;  %v1184_v3 = vld [vmem:[%s1498_s1 + $0x100] sm:$0xff]   ;;  %v19_v5 = vld [vmem:[%s1499_s0 + $0x10] sm:$0xff]  ;;  %v1189_v9 = vld [vmem:[%s1498_s1 + $0x278] sm:$0xff]  }
  0x17   :  { %1020 = vmatpush3.bf16.msra.mxu0 %v1140_v21  ;;  %v1185_v4 = vld [vmem:[%s1498_s1 + $0x1c0] sm:$0xff]   ;;  %v923_v6 = vcombine.low %v19_v5, %v19_v5  ;;  %v924_v7 = vcombine.high %v19_v5, %v19_v5  ;;  %v20_v10 = vld [vmem:[%s1499_s0 + $0x18] sm:$0xff]  ;;  %v1193_v14 = vld [vmem:[%s1498_s1 + $0x270] sm:$0xff]  }
  0x18   :  { %1021 = vmatprep.subr.bf16.mxu0 %v1143_v24  ;;  %v1188_v8 = vld [vmem:[%s1498_s1 + $0x180] sm:$0xff]   ;;  %v925_v11 = vcombine.low %v20_v10, %v20_v10  ;;  %v926_v12 = vcombine.high %v20_v10, %v20_v10  ;;  %v1192_v13 = vld [vmem:[%s1498_s1 + $0x238] sm:$0xff]   ;;  %v1194_v15 = vld [vmem:[%s1498_s1 + $0x230] sm:$0xff]  }
  0x19   :  { %1042 = vmatpush3.bf16.msra.mxu1 %v1142_v23  ;;  %v1195_v16 = vld [vmem:[%s1498_s1 + $0x268] sm:$0xff]   ;;  %v1197_v18 = vld [vmem:[%s1498_s1 + $0x260] sm:$0xff]   ;;  %v1199_v20 = vld [vmem:[%s1498_s1 + $0x258] sm:$0xff]  }
  0x1a   :  { %1043 = vmatprep.subr.bf16.mxu1 %v1145_v26  ;;  %v1196_v17 = vld [vmem:[%s1498_s1 + $0x228] sm:$0xff]   ;;  %v1198_v19 = vld [vmem:[%s1498_s1 + $0x220] sm:$0xff]   ;;  %v1200_v21 = vld [vmem:[%s1498_s1 + $0x218] sm:$0xff]  }
  0x1b   :  { %1022 = vmatpush3.bf16.msra.mxu0 %v1144_v25  ;;  %v21_v22 = vld [vmem:[%s1499_s0 + $0x20] sm:$0xff]  ;;  %v1201_v23 = vld [vmem:[%s1498_s1 + $0x250] sm:$0xff]   ;;  %v1203_v26 = vld [vmem:[%s1498_s1 + $0x248] sm:$0xff]  }
  0x1c   :  { %1023 = vmatprep.subr.bf16.mxu0 %v1147_v28  ;;  %v928_v24 = vcombine.high %v21_v22, %v21_v22  ;;  %v1202_v25 = vld [vmem:[%s1498_s1 + $0x210] sm:$0xff]   ;;  %v1205_v28 = vld [vmem:[%s1498_s1 + $0x240] sm:$0xff]  }
  0x1d   :  { %1044 = vmatpush3.bf16.msra.mxu1 %v1146_v27  ;;  %v1204_v27 = vld [vmem:[%s1498_s1 + $0x208] sm:$0xff]  }
  0x1e   :  { %1045 = vmatprep.subr.bf16.mxu1 %v1149_v30  ;;  %v927_v30 = vcombine.low %v21_v22, %v21_v22 }
  0x1f   :  { %1024 = vmatpush3.bf16.msra.mxu0 %v1148_v29  ;;  %v1206_v29 = vld [vmem:[%s1498_s1 + $0x200] sm:$0xff]  }
  0x20   :  { %1053 = vmatprep.subr.bf16.mxu0 %v1153_v35 }
  0x21   :  { %1046 = vmatpush3.bf16.msra.mxu1 %v1152_v34 }
  0x22   :  { %737 = vmatmul.mubr.bf16.vlgmr.msra.gmra.mxu0 %v919_v32  ;;  %1075 = vmatprep.subr.bf16.mxu1 %v1157_v40 }
  0x23   :  { %1054 = vmatpush3.bf16.msra.mxu0 %v1156_v39  ;;  %816 = vmatprep.mubr.bf16.mxu0 %v924_v7 }
  0x24   :  { %777 = vmatmul.mubr.bf16.vlgmr.msra.gmra.mxu1 %v921_v37  ;;  %1055 = vmatprep.subr.bf16.mxu0 %v1159_v42 }
  0x25   :  { %1076 = vmatpush3.bf16.msra.mxu1 %v1158_v41  ;;  %856 = vmatprep.mubr.bf16.mxu1 %v926_v12 }
  0x26   :  { %1077 = vmatprep.subr.bf16.mxu1 %v1161_v44 }
  0x27   :  { %1056 = vmatpush3.bf16.msra.mxu0 %v1160_v43 }
  0x28   :  { %1057 = vmatprep.subr.bf16.mxu0 %v1163_v46 }
  0x29   :  { %1078 = vmatpush3.bf16.msra.mxu1 %v1162_v45 }
  0x2a   :  { %1079 = vmatprep.subr.bf16.mxu1 %v1165_v48  ;;  %v918_v48 = vld [vmem:[%s1500_s2] ss:$0 sm:$0xff] }
  0x2b   :  { %1058 = vmatpush3.bf16.msra.mxu0 %v1164_v47 }
  0x2c   :  { %1059 = vmatprep.subr.bf16.mxu0 %v1167_v50 }
  0x2d   :  { %1080 = vmatpush3.bf16.msra.mxu1 %v1166_v49 }
  0x2e   :  { %1081 = vmatprep.subr.bf16.mxu1 %v1169_v52 }
  0x2f   :  { %1060 = vmatpush3.bf16.msra.mxu0 %v1168_v51 }
  0x30   :  { %1061 = vmatprep.subr.bf16.mxu0 %v1171_v54 }
  0x31   :  { %1082 = vmatpush3.bf16.msra.mxu1 %v1170_v53 }
  0x32   :  { %1083 = vmatprep.subr.bf16.mxu1 %v1173_v56 }
  0x33   :  { %1062 = vmatpush3.bf16.msra.mxu0 %v1172_v55 }
  0x34   :  { %1063 = vmatprep.subr.bf16.mxu0 %v1175_v58 }
  0x35   :  { %1084 = vmatpush3.bf16.msra.mxu1 %v1174_v57 }
  0x36   :  { %1085 = vmatprep.subr.bf16.mxu1 %v1177_v60 }
  0x37   :  { %1064 = vmatpush3.bf16.msra.mxu0 %v1176_v59 }
  0x38   :  { %1065 = vmatprep.subr.bf16.mxu0 %v1179_v62 }
  0x39   :  { %1086 = vmatpush3.bf16.msra.mxu1 %v1178_v61 }
  0x3a   :  { %1087 = vmatprep.subr.bf16.mxu1 %v1181_v0 }
  0x3b   :  { %1066 = vmatpush3.bf16.msra.mxu0 %v1180_v63 }
  0x3c   :  { %1067 = vmatprep.subr.bf16.mxu0 %v1183_v2 }
  0x3d   :  { %1088 = vmatpush3.bf16.msra.mxu1 %v1182_v1 }
  0x3e   :  { %1089 = vmatprep.subr.bf16.mxu1 %v1185_v4 }
  0x3f   :  { %1068 = vmatpush3.bf16.msra.mxu0 %v1184_v3 }
  0x40   :  { %1097 = vmatprep.subr.bf16.mxu0 %v1189_v9 }
  0x41   :  { %1090 = vmatpush3.bf16.msra.mxu1 %v1188_v8 }
  0x42   :  { %817 = vmatmul.mubr.bf16.vlgmr.msra.gmra.mxu0 %v923_v6 }
  0x43   :  { %1098 = vmatpush3.bf16.msra.mxu0 %v1192_v13  ;;  %896 = vmatprep.mubr.bf16.mxu0 %v928_v24 }
  0x44   :  { %857 = vmatmul.mubr.bf16.vlgmr.msra.gmra.mxu1 %v925_v11  ;;  %1099 = vmatprep.subr.bf16.mxu0 %v1193_v14 }
  0x47   :  { %1100 = vmatpush3.bf16.msra.mxu0 %v1194_v15 }
  0x48   :  { %1101 = vmatprep.subr.bf16.mxu0 %v1195_v16 }
  0x4b   :  { %1102 = vmatpush3.bf16.msra.mxu0 %v1196_v17 }
  0x4c   :  { %1103 = vmatprep.subr.bf16.mxu0 %v1197_v18 }
  0x4f   :  { %1104 = vmatpush3.bf16.msra.mxu0 %v1198_v19 }
  0x50   :  { %1105 = vmatprep.subr.bf16.mxu0 %v1199_v20 }
  0x53   :  { %1106 = vmatpush3.bf16.msra.mxu0 %v1200_v21 }
  0x54   :  { %1107 = vmatprep.subr.bf16.mxu0 %v1201_v23 }
  0x57   :  { %1108 = vmatpush3.bf16.msra.mxu0 %v1202_v25 }
  0x58   :  { %1109 = vmatprep.subr.bf16.mxu0 %v1203_v26 }
  0x5b   :  { %1110 = vmatpush3.bf16.msra.mxu0 %v1204_v27 }
  0x5c   :  { %1111 = vmatprep.subr.bf16.mxu0 %v1205_v28 }
  0x5f   :  { %1112 = vmatpush3.bf16.msra.mxu0 %v1206_v29 }
  0x62   :  { %897 = vmatmul.mubr.bf16.vlgmr.msra.gmra.mxu0 %v927_v30 }
  0xe2   :  { %v1025_v31 = vpop.f32.mrf.mxu0 }
  0xe4   :  { %v1026_v32 = vpop.f32.mrf.mxu0  ;;  %v1047_v33 = vpop.f32.mrf.mxu1 }
  0xe5   :  { %v1027_v47 = vadd.f32 %v1026_v32, %v1025_v31 }
  0xe6   :  { %v1028_v34 = vpop.f32.mrf.mxu0  ;;  %v1048_v35 = vpop.f32.mrf.mxu1 }
  0xe7   :  { %v739_v49 = vadd.f32 %v1027_v47, %v918_v48  ;;  %v1049_v50 = vadd.f32 %v1048_v35, %v1047_v33 }
  0xe8   :  { %v1029_v36 = vpop.f32.mrf.mxu0  ;;  %v1050_v37 = vpop.f32.mrf.mxu1 }
  0xe9   :  { %v779_v52 = vadd.f32 %v1049_v50, %v739_v49 }
  0xea   :  { %v1051_v38 = vpop.f32.mrf.mxu1 }
 0x102   :  { %v1069_v39 = vpop.f32.mrf.mxu0 }
 0x104   :  { %v1070_v40 = vpop.f32.mrf.mxu0  ;;  %v1091_v41 = vpop.f32.mrf.mxu1 }
 0x105   :  { %v1071_v51 = vadd.f32 %v1070_v40, %v1069_v39 }
 0x106   :  { %v1072_v42 = vpop.f32.mrf.mxu0  ;;  %v1092_v43 = vpop.f32.mrf.mxu1 }
 0x107   :  { %v819_v53 = vadd.f32 %v1071_v51, %v779_v52  ;;  %v1093_v54 = vadd.f32 %v1092_v43, %v1091_v41 }
 0x108   :  { %v1073_v44 = vpop.f32.mrf.mxu0  ;;  %v1094_v45 = vpop.f32.mrf.mxu1 }
 0x109   :  { %v859_v57 = vadd.f32 %v1093_v54, %v819_v53 }
 0x10a   :  { %v1095_v46 = vpop.f32.mrf.mxu1 }
 0x122   :  { %v1113_v55 = vpop.f32.mrf.mxu0 }
 0x124   :  { %v1114_v56 = vpop.f32.mrf.mxu0 }
 0x125   :  { %v1115_v58 = vadd.f32 %v1114_v56, %v1113_v55 }
 0x126   :  { %v1116_v59 = vpop.f32.mrf.mxu0 }
 0x127   :  { %v899_v60 = vadd.f32 %v1115_v58, %v859_v57 }
 0x128   :  { %v1117_v61 = vpop.f32.mrf.mxu0 }
 0x129   :  { %v904_v62 = vmax.f32 %v899_v60, 0.0  ;;  %v907_v63 = vsub.f32 0.0, %v899_v60 }
 0x12b   :  { %906 = vst.msk [vmem:[%s1501_s3] sm:$0xff] %vm905_vm0, %v904_v62  ;;  %v908_v0 = vmax.f32 %v907_v63, 0.0 }
 0x12d   :  { %909 = vst.msk [vmem:[%s1502_s4] sm:$0xff] %vm905_vm0, %v908_v0 }

</bundles_post_ra>
